<compile_context>
chip_gen: v7x
topology: tpu7x:2x2x1
jax: 0.10.0
libtpu: 0.0.40
codegen_flags: <defaults>
</compile_context>

<pallas_src>
import functools

import jax
import jax.numpy as jnp
from jax import lax
from jax.experimental import pallas as pl
from jax.experimental.pallas import tpu as pltpu


def _round_up(x, m):
    return (x + m - 1) // m * m


def _pick_tile_h(h, cap=64):
    """Largest divisor of h not exceeding cap (default spatial tile height)."""
    best = 1
    for t in range(1, min(h, cap) + 1):
        if h % t == 0:
            best = t
    return best


# ----------------------------- Pallas kernel --------------------------------

def _conv3xc_kernel(x_ref, w_ref, b_ref, o_ref, xpad_ref, *, tile_h, W, relu):
    """One (batch, H-tile) block of the merged 3x3 / stride-1 / pad-1 conv.

    x_ref   : (1, H, W, Cin)            bf16, full (un-padded) image of batch b
    w_ref   : (9*Cin, Cout_pad)         bf16, 3x3 taps folded into K, lane-dense
    b_ref   : (1, Cout_pad)             f32 bias (zero-padded)
    o_ref   : (1, tile_h, W, Cout_pad)  output tile (lane-dense last dim)
    xpad_ref: (tile_h+2, W+2, Cin)      bf16 VMEM scratch: tile + zero halo
    """
    t = pl.program_id(1)
    n_t = pl.num_programs(1)
    row0 = pl.multiple_of(t * tile_h, tile_h)

    cin = x_ref.shape[-1]
    cout_pad = o_ref.shape[-1]

    # ---- build the zero-padded tile in VMEM (halo handled here, no HBM pad) -
    xpad_ref[...] = jnp.zeros_like(xpad_ref)
    xpad_ref[1:tile_h + 1, 1:W + 1, :] = x_ref[0, pl.ds(row0, tile_h), :, :]

    @pl.when(t > 0)
    def _():  # top halo row = last row of the previous tile
        xpad_ref[0:1, 1:W + 1, :] = x_ref[0, pl.ds(row0 - 1, 1), :, :]

    @pl.when(t < n_t - 1)
    def _():  # bottom halo row = first row of the next tile
        xpad_ref[tile_h + 1:tile_h + 2, 1:W + 1, :] = (
            x_ref[0, pl.ds(row0 + tile_h, 1), :, :])

    # ---- im2col: 9 shifted views concatenated along the channel (lane) axis -
    taps = []
    for kh in range(3):
        for kw in range(3):
            taps.append(xpad_ref[kh:kh + tile_h, kw:kw + W, :])
    patch = jnp.concatenate(taps, axis=-1).reshape(tile_h * W, 9 * cin)

    # single MXU matmul: (tile_h*W, 9*Cin) x (9*Cin, Cout_pad), f32 accumulate
    acc = lax.dot_general(
        patch, w_ref[...],
        dimension_numbers=(((1,), (0,)), ((), ())),
        preferred_element_type=jnp.float32)
    acc = acc + b_ref[...]
    if relu:
        acc = jnp.where(acc > 0, acc, 0.05 * acc)   # leaky_relu(0.05)
    o_ref[0] = acc.reshape(tile_h, W, cout_pad).astype(o_ref.dtype)


def conv3xc_eval_forward(x_nchw, weight_oihw, bias, *, relu=False, tile_h=None):
    """Eval-mode Conv3XC forward (stride=1): single merged 3x3 conv, pad=1."""
    B, Cin, H, W = x_nchw.shape
    Cout = weight_oihw.shape[0]
    Cout_pad = _round_up(Cout, 128)          # lane-dense stores & matmul N

    if tile_h is None:
        tile_h = _pick_tile_h(H)
    assert H % tile_h == 0, "tile_h must divide H"
    n_t = H // tile_h

    # NCHW -> NHWC; bf16 halves HBM/VMEM traffic (f32 accumulation in-kernel).
    # TODO(synk): accept NHWC directly to avoid the boundary transposes when
    # this conv is embedded in a larger NHWC pipeline.
    x_nhwc = jnp.transpose(x_nchw, (0, 2, 3, 1)).astype(jnp.bfloat16)

    # (Cout, Cin, 3, 3) -> (3, 3, Cin, Cout) -> (9*Cin, Cout_pad):
    # taps folded into the contraction dim, single lane-dense 2D operand.
    w_hwio = jnp.transpose(weight_oihw, (2, 3, 1, 0))
    w2d = w_hwio.reshape(9 * Cin, Cout)
    w2d = jnp.pad(w2d, ((0, 0), (0, Cout_pad - Cout))).astype(jnp.bfloat16)
    b2d = jnp.pad(bias, (0, Cout_pad - Cout)).reshape(1, Cout_pad).astype(jnp.float32)

    out_dtype = x_nchw.dtype
    flops = 2 * B * H * W * 9 * Cin * Cout_pad
    bytes_accessed = (x_nhwc.size * 2 + w2d.size * 2 + b2d.size * 4
                      + B * H * W * Cout_pad * jnp.dtype(out_dtype).itemsize)
    cost = pl.CostEstimate(flops=flops, transcendentals=0,
                           bytes_accessed=bytes_accessed)

    out_nhwc = pl.pallas_call(
        functools.partial(_conv3xc_kernel, tile_h=tile_h, W=W, relu=relu),
        out_shape=jax.ShapeDtypeStruct((B, H, W, Cout_pad), out_dtype),
        grid=(B, n_t),
        in_specs=[
            pl.BlockSpec((1, H, W, Cin), lambda b, t: (b, 0, 0, 0)),
            pl.BlockSpec((9 * Cin, Cout_pad), lambda b, t: (0, 0)),
            pl.BlockSpec((1, Cout_pad), lambda b, t: (0, 0)),
        ],
        out_specs=pl.BlockSpec((1, tile_h, W, Cout_pad),
                               lambda b, t: (b, t, 0, 0)),
        scratch_shapes=[pltpu.VMEM((tile_h + 2, W + 2, Cin), jnp.bfloat16)],
        compiler_params=pltpu.CompilerParams(
            dimension_semantics=("parallel", "parallel")),
        cost_estimate=cost,
    )(x_nhwc, w2d, b2d)

    # drop channel padding, back to NCHW.
    return jnp.transpose(out_nhwc[..., :Cout], (0, 3, 1, 2))


# --------------------- parameter init + weight merging ----------------------

def init_conv3xc_params(key, c_in, c_out, gain=1):
    """Deterministic synthetic parameters mirroring Conv3XC.__init__ shapes."""
    ks = jax.random.split(key, 8)
    mk = lambda k, shape: (jax.random.normal(k, shape, jnp.float32) * 0.1)
    params = {
        # self.conv[0]: 1x1, c_in -> c_in*gain
        "w1": mk(ks[0], (c_in * gain, c_in, 1, 1)),
        "b1": mk(ks[1], (c_in * gain,)),
        # self.conv[1]: 3x3, c_in*gain -> c_out*gain
        "w2": mk(ks[2], (c_out * gain, c_in * gain, 3, 3)),
        "b2": mk(ks[3], (c_out * gain,)),
        # self.conv[2]: 1x1, c_out*gain -> c_out
        "w3": mk(ks[4], (c_out, c_out * gain, 1, 1)),
        "b3": mk(ks[5], (c_out,)),
        # self.sk: 1x1, c_in -> c_out
        "sk_w": mk(ks[6], (c_out, c_in, 1, 1)),
        "sk_b": mk(ks[7], (c_out,)),
    }
    return params


def merge_conv3xc_params(p):
    """Replicates Conv3XC.update_params(): fold 1x1 -> 3x3 -> 1x1 (+1x1 skip)
    into a single 3x3 weight/bias pair (w1, w3, sk are 1x1, so the torch
    flip/permute/conv2d dance reduces to einsums)."""
    w1 = p["w1"][:, :, 0, 0]          # (c_mid, c_in)
    w3 = p["w3"][:, :, 0, 0]          # (c_out, c_mid2)
    # compose conv1x1(w1) then conv3x3(w2)
    w = jnp.einsum("omhw,mi->oihw", p["w2"], w1)        # (c_mid2, c_in, 3, 3)
    b = jnp.einsum("omhw,m->o", p["w2"], p["b1"]) + p["b2"]
    # compose with trailing conv1x1(w3)
    weight_concat = jnp.einsum("po,oihw->pihw", w3, w)  # (c_out, c_in, 3, 3)
    bias_concat = jnp.einsum("po,o->p", w3, b) + p["b3"]
    # padded 1x1 skip conv -> centered 3x3
    sk_w3 = jnp.pad(p["sk_w"], ((0, 0), (0, 0), (1, 1), (1, 1)))
    weight_concat = weight_concat + sk_w3
    bias_concat = bias_concat + p["sk_b"]
    return weight_concat, bias_concat


# ------------------------------- reference ----------------------------------

def reference_forward(x_nchw, weight_oihw, bias, *, relu=False):
    """XLA reference with matching numerics (bf16 inputs, f32 accumulation)."""
    x_nhwc = jnp.transpose(x_nchw, (0, 2, 3, 1)).astype(jnp.bfloat16)
    w_hwio = jnp.transpose(weight_oihw, (2, 3, 1, 0)).astype(jnp.bfloat16)
    out = lax.conv_general_dilated(
        x_nhwc, w_hwio, window_strides=(1, 1), padding=[(1, 1), (1, 1)],
        dimension_numbers=("NHWC", "HWIO", "NHWC"),
        preferred_element_type=jnp.float32)
    out = out + bias[None, None, None, :].astype(jnp.float32)
    if relu:
        out = jnp.where(out > 0, out, 0.05 * out)
    return jnp.transpose(out, (0, 3, 1, 2)).astype(x_nchw.dtype)


# --------------------------------- main --------------------------------------

if __name__ == "__main__":
    # TODO(synk): training-mode branch (explicit 3-conv stack + skip) and
    # stride > 1 are not exercised; the module's eval path (the one actually
    # used for inference) is implemented.
    B, C_IN, C_OUT, H, W = 2, 4, 8, 16, 16

    key = jax.random.PRNGKey(0)
    k_x, k_p = jax.random.split(key)
    x = jax.random.normal(k_x, (B, C_IN, H, W), jnp.float32)  # NCHW, like torch

    params = init_conv3xc_params(k_p, C_IN, C_OUT, gain=1)
    w_merged, b_merged = merge_conv3xc_params(params)

    ok = True
    # exercise: default single-tile path, explicit 2-tile halo path, relu path.
    for relu, th in ((False, None), (False, 8), (True, 8)):
        out = conv3xc_eval_forward(x, w_merged, b_merged, relu=relu, tile_h=th)
        out = jax.block_until_ready(out)
        ref = reference_forward(x, w_merged, b_merged, relu=relu)
        ok = ok and bool(jnp.allclose(out, ref, atol=2e-3, rtol=2e-3))

    print("KERNEL_OK" if ok else "KERNEL_MISMATCH")
</pallas_src>

<mosaic_0001>
module attributes {stable_mosaic.version = 11 : i64} {
  func.func @_conv3xc_kernel(%arg0: i32, %arg1: i32, %arg2: memref<1x16x16x4xbf16, #tpu.memory_space<vmem>>, %arg3: memref<36x128xbf16, #tpu.memory_space<vmem>>, %arg4: memref<1x128xf32, #tpu.memory_space<vmem>>, %arg5: memref<1x16x16x128xf32, #tpu.memory_space<vmem>>, %arg6: memref<18x18x4xbf16, #tpu.memory_space<vmem>>) attributes {dimension_semantics = [#tpu.dimension_semantics<parallel>, #tpu.dimension_semantics<parallel>], iteration_bounds = array<i64: 2, 1>, scalar_prefetch = 0 : i64, scratch_operands = 1 : i64, tpu.core_type = #tpu.core_type<tc>, window_params = [{transform_indices = @transform_0, window_bounds = array<i64: 1, 16, 16, 4>}, {pipeline_mode = #tpu.pipeline_mode<synchronous>, transform_indices = @transform_1, window_bounds = array<i64: 36, 128>}, {pipeline_mode = #tpu.pipeline_mode<synchronous>, transform_indices = @transform_2, window_bounds = array<i64: 1, 128>}, {transform_indices = @transform_3, window_bounds = array<i64: 1, 16, 16, 128>}]} {
    %c16_i32 = arith.constant 16 : i32
    %0 = arith.muli %arg1, %c16_i32 : i32
    %1 = tpu.assume_multiple %0, 16 : i32
    %cst = arith.constant 0.000000e+00 : bf16
    %2 = vector.broadcast %cst : bf16 to vector<18x18x4xbf16>
    %c0 = arith.constant 0 : index
    %c0_0 = arith.constant 0 : index
    %c0_1 = arith.constant 0 : index
    %3 = vector.load %arg6[%c0, %c0_0, %c0_1] : memref<18x18x4xbf16, #tpu.memory_space<vmem>>, vector<18x18x4xbf16>
    tpu.vector_store %arg6[%c0, %c0_0, %c0_1], %2 {strides = array<i32>} : memref<18x18x4xbf16, #tpu.memory_space<vmem>>, vector<18x18x4xbf16>,
    %c0_2 = arith.constant 0 : index
    %4 = arith.index_cast %1 : i32 to index
    %c0_3 = arith.constant 0 : index
    %c0_4 = arith.constant 0 : index
    %5 = vector.load %arg2[%c0_2, %4, %c0_3, %c0_4] : memref<1x16x16x4xbf16, #tpu.memory_space<vmem>>, vector<1x16x16x4xbf16>
    %6 = vector.shape_cast %5 : vector<1x16x16x4xbf16> to vector<16x16x4xbf16>
    %c1 = arith.constant 1 : index
    %c1_5 = arith.constant 1 : index
    %c0_6 = arith.constant 0 : index
    %7 = vector.load %arg6[%c1, %c1_5, %c0_6] : memref<18x18x4xbf16, #tpu.memory_space<vmem>>, vector<16x16x4xbf16>
    tpu.vector_store %arg6[%c1, %c1_5, %c0_6], %6 {strides = array<i32>} : memref<18x18x4xbf16, #tpu.memory_space<vmem>>, vector<16x16x4xbf16>,
    %c0_i32 = arith.constant 0 : i32
    %8 = arith.cmpi sgt, %arg1, %c0_i32 : i32
    %9 = arith.extui %8 : i1 to i32
    %c0_i32_7 = arith.constant 0 : i32
    %10 = arith.cmpi ne, %9, %c0_i32_7 : i32
    scf.if %10 {
      %c1_i32 = arith.constant 1 : i32
      %34 = arith.subi %1, %c1_i32 : i32
      %c0_45 = arith.constant 0 : index
      %35 = arith.index_cast %34 : i32 to index
      %c0_46 = arith.constant 0 : index
      %c0_47 = arith.constant 0 : index
      %36 = vector.load %arg2[%c0_45, %35, %c0_46, %c0_47] : memref<1x16x16x4xbf16, #tpu.memory_space<vmem>>, vector<1x1x16x4xbf16>
      %37 = vector.shape_cast %36 : vector<1x1x16x4xbf16> to vector<1x16x4xbf16>
      %c0_48 = arith.constant 0 : index
      %c1_49 = arith.constant 1 : index
      %c0_50 = arith.constant 0 : index
      %38 = vector.load %arg6[%c0_48, %c1_49, %c0_50] : memref<18x18x4xbf16, #tpu.memory_space<vmem>>, vector<1x16x4xbf16>
      tpu.vector_store %arg6[%c0_48, %c1_49, %c0_50], %37 {strides = array<i32>} : memref<18x18x4xbf16, #tpu.memory_space<vmem>>, vector<1x16x4xbf16>,
    } else {
    }
    %c0_i32_8 = arith.constant 0 : i32
    %11 = arith.cmpi slt, %arg1, %c0_i32_8 : i32
    %12 = arith.extui %11 : i1 to i32
    %c0_i32_9 = arith.constant 0 : i32
    %13 = arith.cmpi ne, %12, %c0_i32_9 : i32
    scf.if %13 {
      %c16_i32_45 = arith.constant 16 : i32
      %34 = arith.addi %1, %c16_i32_45 : i32
      %c0_46 = arith.constant 0 : index
      %35 = arith.index_cast %34 : i32 to index
      %c0_47 = arith.constant 0 : index
      %c0_48 = arith.constant 0 : index
      %36 = vector.load %arg2[%c0_46, %35, %c0_47, %c0_48] : memref<1x16x16x4xbf16, #tpu.memory_space<vmem>>, vector<1x1x16x4xbf16>
      %37 = vector.shape_cast %36 : vector<1x1x16x4xbf16> to vector<1x16x4xbf16>
      %c17 = arith.constant 17 : index
      %c1_49 = arith.constant 1 : index
      %c0_50 = arith.constant 0 : index
      %38 = vector.load %arg6[%c17, %c1_49, %c0_50] : memref<18x18x4xbf16, #tpu.memory_space<vmem>>, vector<1x16x4xbf16>
      tpu.vector_store %arg6[%c17, %c1_49, %c0_50], %37 {strides = array<i32>} : memref<18x18x4xbf16, #tpu.memory_space<vmem>>, vector<1x16x4xbf16>,
    } else {
    }
    %c0_10 = arith.constant 0 : index
    %c0_11 = arith.constant 0 : index
    %c0_12 = arith.constant 0 : index
    %14 = vector.load %arg6[%c0_10, %c0_11, %c0_12] : memref<18x18x4xbf16, #tpu.memory_space<vmem>>, vector<16x16x4xbf16>
    %c0_13 = arith.constant 0 : index
    %c1_14 = arith.constant 1 : index
    %c0_15 = arith.constant 0 : index
    %15 = vector.load %arg6[%c0_13, %c1_14, %c0_15] : memref<18x18x4xbf16, #tpu.memory_space<vmem>>, vector<16x16x4xbf16>
    %c0_16 = arith.constant 0 : index
    %c2 = arith.constant 2 : index
    %c0_17 = arith.constant 0 : index
    %16 = vector.load %arg6[%c0_16, %c2, %c0_17] : memref<18x18x4xbf16, #tpu.memory_space<vmem>>, vector<16x16x4xbf16>
    %c1_18 = arith.constant 1 : index
    %c0_19 = arith.constant 0 : index
    %c0_20 = arith.constant 0 : index
    %17 = vector.load %arg6[%c1_18, %c0_19, %c0_20] : memref<18x18x4xbf16, #tpu.memory_space<vmem>>, vector<16x16x4xbf16>
    %c1_21 = arith.constant 1 : index
    %c1_22 = arith.constant 1 : index
    %c0_23 = arith.constant 0 : index
    %18 = vector.load %arg6[%c1_21, %c1_22, %c0_23] : memref<18x18x4xbf16, #tpu.memory_space<vmem>>, vector<16x16x4xbf16>
    %c1_24 = arith.constant 1 : index
    %c2_25 = arith.constant 2 : index
    %c0_26 = arith.constant 0 : index
    %19 = vector.load %arg6[%c1_24, %c2_25, %c0_26] : memref<18x18x4xbf16, #tpu.memory_space<vmem>>, vector<16x16x4xbf16>
    %c2_27 = arith.constant 2 : index
    %c0_28 = arith.constant 0 : index
    %c0_29 = arith.constant 0 : index
    %20 = vector.load %arg6[%c2_27, %c0_28, %c0_29] : memref<18x18x4xbf16, #tpu.memory_space<vmem>>, vector<16x16x4xbf16>
    %c2_30 = arith.constant 2 : index
    %c1_31 = arith.constant 1 : index
    %c0_32 = arith.constant 0 : index
    %21 = vector.load %arg6[%c2_30, %c1_31, %c0_32] : memref<18x18x4xbf16, #tpu.memory_space<vmem>>, vector<16x16x4xbf16>
    %c2_33 = arith.constant 2 : index
    %c2_34 = arith.constant 2 : index
    %c0_35 = arith.constant 0 : index
    %22 = vector.load %arg6[%c2_33, %c2_34, %c0_35] : memref<18x18x4xbf16, #tpu.memory_space<vmem>>, vector<16x16x4xbf16>
    %23 = tpu.concatenate %14, %15, %16, %17, %18, %19, %20, %21, %22 in 2 : vector<16x16x4xbf16>, vector<16x16x4xbf16>, vector<16x16x4xbf16>, vector<16x16x4xbf16>, vector<16x16x4xbf16>, vector<16x16x4xbf16>, vector<16x16x4xbf16>, vector<16x16x4xbf16>, vector<16x16x4xbf16> -> vector<16x16x36xbf16>
    %24 = vector.shape_cast %23 : vector<16x16x36xbf16> to vector<256x36xbf16>
    %c0_36 = arith.constant 0 : index
    %c0_37 = arith.constant 0 : index
    %25 = vector.load %arg3[%c0_36, %c0_37] : memref<36x128xbf16, #tpu.memory_space<vmem>>, vector<36x128xbf16>
    %cst_38 = arith.constant dense<0.000000e+00> : vector<256x128xf32>
    %26 = tpu.matmul %24, %25, %cst_38 {dimension_numbers = #tpu.dot_dimension_numbers<[1], [0], [0], [1], [0, 0, 1, 1], [], []>} : vector<256x36xbf16>, vector<36x128xbf16>, vector<256x128xf32> -> vector<256x128xf32>
    %c0_39 = arith.constant 0 : index
    %c0_40 = arith.constant 0 : index
    %27 = vector.load %arg4[%c0_39, %c0_40] : memref<1x128xf32, #tpu.memory_space<vmem>>, vector<1x128xf32>
    %28 = vector.broadcast %27 : vector<1x128xf32> to vector<256x128xf32>
    %29 = arith.addf %26, %28 : vector<256x128xf32>
    %30 = vector.shape_cast %29 : vector<256x128xf32> to vector<16x16x128xf32>
    %c0_41 = arith.constant 0 : index
    %c0_42 = arith.constant 0 : index
    %c0_43 = arith.constant 0 : index
    %c0_44 = arith.constant 0 : index
    %31 = vector.load %arg5[%c0_41, %c0_42, %c0_43, %c0_44] : memref<1x16x16x128xf32, #tpu.memory_space<vmem>>, vector<1x16x16x128xf32>
    %32 = vector.shape_cast %31 : vector<1x16x16x128xf32> to vector<16x16x128xf32>
    %33 = vector.shape_cast %30 : vector<16x16x128xf32> to vector<1x16x16x128xf32>
    tpu.vector_store %arg5[%c0_41, %c0_42, %c0_43, %c0_44], %33 {strides = array<i32>} : memref<1x16x16x128xf32, #tpu.memory_space<vmem>>, vector<1x16x16x128xf32>,
    return
  }
  func.func @transform_0(%arg0: i32, %arg1: i32) -> (i32, i32, i32, i32) {
    %c0_i32 = arith.constant 0 : i32
    %c0_i32_0 = arith.constant 0 : i32
    %c0_i32_1 = arith.constant 0 : i32
    %c0_i32_2 = arith.constant 0 : i32
    return %arg0, %c0_i32, %c0_i32_0, %c0_i32_1 : i32, i32, i32, i32
  }
  func.func @transform_1(%arg0: i32, %arg1: i32) -> (i32, i32) {
    %c0_i32 = arith.constant 0 : i32
    %c0_i32_0 = arith.constant 0 : i32
    %c0_i32_1 = arith.constant 0 : i32
    return %c0_i32, %c0_i32_0 : i32, i32
  }
  func.func @transform_2(%arg0: i32, %arg1: i32) -> (i32, i32) {
    %c0_i32 = arith.constant 0 : i32
    %c0_i32_0 = arith.constant 0 : i32
    %c0_i32_1 = arith.constant 0 : i32
    return %c0_i32, %c0_i32_0 : i32, i32
  }
  func.func @transform_3(%arg0: i32, %arg1: i32) -> (i32, i32, i32, i32) {
    %c0_i32 = arith.constant 0 : i32
    %c0_i32_0 = arith.constant 0 : i32
    %c0_i32_1 = arith.constant 0 : i32
    return %arg0, %arg1, %c0_i32, %c0_i32_0 : i32, i32, i32, i32
  }
}

</mosaic_0001>

<bundles_post_ra>
// kernel: tpu_custom_call.1
= control target key start
LH: loop header
LB: loop body
LE: loop exit
PB: predicated region body
PF: predicated region fallthrough
CT: control target
= control target key end

     0   :  { %8 = vsyncpa [#allocation4], 0  ;;  %s5161_s0 = inlined_call_operand.vmem [shape: bf16[2,16,16,4], index: 0, kind: input, shape index: {}]   ;;  %s5162_s1 = inlined_call_operand.vmem [shape: bf16[36,128], index: 1, kind: input, shape index: {}]   ;;  %s5163_s2 = inlined_call_operand.vmem [shape: f32[1,128], index: 2, kind: input, shape index: {}]   ;;  %s5164_s3 = inlined_call_operand.hbm [shape: f32[2,16,16,128], index: 3, kind: output, shape index: {}]  }
   0x1   :  { %10 = vsyncpa [#allocation4 + $0x1], 0  ;;  %s3677_s12 = smov 0   ;;  %s3679_s13 = smov 0  }
   0x2   :  { %s3681_s14 = smov 0   ;;  %s3683_s15 = smov 0  }
   0x3   :  { %s3685_s16 = smov 0   ;;  %s3687_s17 = smov 0  }
   0x4 LB: > { %s3111_s18 = sadd.s32 4294967295, %s3644_s17   ;;  %s3112_s19 = sadd.s32 4294967294, %s3644_s17   ;;  %s3644_s17 = sphi %s3687_s17, %s16_s17   ;;  %s3640_s16 = sphi %s3685_s16, %s5194_s16   ;;  %s3636_s15 = sphi %s3683_s15, %s5193_s15   ;;  %s3632_s14 = sphi %s3681_s14, %s5192_s14   ;;  %s3628_s13 = sphi %s3679_s13, %s5191_s13   ;;  %s3624_s12 = sphi %s3677_s12, %s5190_s12  }
   0x5   : > { %s28_s20 = sadd.s32 1, %s3640_s16  ;;  %s105_s21 = sadd.s32 1, %s3632_s14 }
   0x6   : > { %p30_p0 = scmp.ge.s32.totalorder %s28_s20, 2  ;;  %p115_p1 = scmp.ne.s32.totalorder %s3632_s14, %s3628_s13 }
   0x7   : > { %p116_p2 = scmp.eq.s32.totalorder %s3111_s18, 1  ;;  %p121_p3 = scmp.ne.s32.totalorder %s3628_s13, %s3624_s12 }
   0x8   : > { %s5196_s20 = smov (%p30_p0, %s28_s20), 0  ;;  %p122_p5 = scmp.eq.s32.totalorder %s3112_s19, 1 }
   0x9   : > { %p3717_p4 = por %p116_p2, %p115_p1  ;;  %s100_s23 = ssub.s32 %s3640_s16, %s5196_s20 }
   0xa   : > { %p3115_p6 = scmp.ge.s32.totalorder %s3644_s17, 1  ;;  %p103_p7 = scmp.eq.s32.totalorder %s100_s23, 0 }
   0xb   : > { %p3724_p8 = por %p122_p5, %p121_p3  ;;  %p154_p9 = scmp.lt.s32.totalorder %s3644_s17, 3 }
   0xc   : > { %s3730_s25 = scalar_select %p103_p7, %s3632_s14, %s105_s21  }
   0xd   : > { %p155_p10 = pnand %p3115_p6, %p154_p9 }
   0xf   : > { %158 = sbr.rel (%p155_p10) target bundleno = 672 (0x2a0), region = 32 }
  0x16   : > { %vm186_vm0 = vcmask 27648   ;;  %vm189_vm1 = vcmask 24576   ;;  %v3646_v0 = vmov 0   ;;  %p178_p11 = scmp.lt.s32.totalorder %s3636_s15, 1  ;;  %vm1387_vm2 = vcmask 1046528   ;;  %s3647_s4 = smov 8  }
  0x17   : > { %187 = vst.msk [vmem:[#allocation2] sm:$0xf] %vm186_vm0, %v3646_v0  ;;  %188 = vst.msk [vmem:[#allocation2 + $0x4] sm:$0xf] %vm186_vm0, %v3646_v0  ;;  %vm277_vm3 = vsmask.f32 256 }
  0x18   : > { %190 = vst.msk [vmem:[#allocation2 + $0x8] sm:$0x1] %vm189_vm1, %v3646_v0  ;;  %193 = vst.msk [vmem:[#allocation2 + $0x14] sm:$0x1] %vm189_vm1, %v3646_v0  ;;  %s179_s26 = scalar_select %p178_p11, %s3636_s15, 1  ;;  %vm2816_vm10 = vcmask 1041408  }
  0x19   : > { %191 = vst.msk [vmem:[#allocation2 + $0xc] sm:$0xf] %vm186_vm0, %v3646_v0  ;;  %192 = vst.msk [vmem:[#allocation2 + $0x10] sm:$0xf] %vm186_vm0, %v3646_v0  ;;  %vm278_vm4 = vsmask.f32 4368 }
  0x1a   : > { %194 = vst.msk [vmem:[#allocation2 + $0x18] sm:$0xf] %vm186_vm0, %v3646_v0  ;;  %195 = vst.msk [vmem:[#allocation2 + $0x1c] sm:$0xf] %vm186_vm0, %v3646_v0  ;;  %s3292_s27 = sshll.u32 %s179_s26, 7  ;;  %s3648_s5 = smov 4  }
  0x1b   : > { %196 = vst.msk [vmem:[#allocation2 + $0x20] sm:$0x1] %vm189_vm1, %v3646_v0  ;;  %199 = vst.msk [vmem:[#allocation2 + $0x2c] sm:$0x1] %vm189_vm1, %v3646_v0  ;;  %s3791_s30 = scalar_lea.vmem %s5161_s0, %s3292_s27  ;;  %vm602_vm5 = vsmask.f32 7938 }
  0x1c   : > { %197 = vst.msk [vmem:[#allocation2 + $0x24] sm:$0xf] %vm186_vm0, %v3646_v0  ;;  %198 = vst.msk [vmem:[#allocation2 + $0x28] sm:$0xf] %vm186_vm0, %v3646_v0  ;;  %vm1114_vm6 = vsmask.f32 7424 }
  0x1d   : > { %200 = vst.msk [vmem:[#allocation2 + $0x30] sm:$0xf] %vm186_vm0, %v3646_v0  ;;  %201 = vst.msk [vmem:[#allocation2 + $0x34] sm:$0xf] %vm186_vm0, %v3646_v0  ;;  %v261_v1 = vld [vmem:[%s3791_s30 + $0x40] sm:$0xf] }
  0x1e   : > { %202 = vst.msk [vmem:[#allocation2 + $0x38] sm:$0x1] %vm189_vm1, %v3646_v0  ;;  %205 = vst.msk [vmem:[#allocation2 + $0x44] sm:$0x1] %vm189_vm1, %v3646_v0  ;;  %v262_v2 = vld [vmem:[%s3791_s30 + $0x44] sm:$0xf] }
  0x1f   : > { %203 = vst.msk [vmem:[#allocation2 + $0x3c] sm:$0xf] %vm186_vm0, %v3646_v0  ;;  %204 = vst.msk [vmem:[#allocation2 + $0x40] sm:$0xf] %vm186_vm0, %v3646_v0  ;;  %v245_v3 = vld [vmem:[%s3791_s30] sm:$0xf] }
  0x20   : > { %206 = vst.msk [vmem:[#allocation2 + $0x48] sm:$0xf] %vm186_vm0, %v3646_v0  ;;  %207 = vst.msk [vmem:[#allocation2 + $0x4c] sm:$0xf] %vm186_vm0, %v3646_v0  ;;  %v794_v4 = vld [vmem:[#allocation2 + $0x4] sm:$0xf] }
  0x21   : > { %208 = vst.msk [vmem:[#allocation2 + $0x50] sm:$0x1] %vm189_vm1, %v3646_v0  ;;  %211 = vst.msk [vmem:[#allocation2 + $0x5c] sm:$0x1] %vm189_vm1, %v3646_v0  ;;  %v841_v5 = vld [vmem:[#allocation2] sm:$0xe] }
  0x22   : > { %209 = vst.msk [vmem:[#allocation2 + $0x54] sm:$0xf] %vm186_vm0, %v3646_v0  ;;  %210 = vst.msk [vmem:[#allocation2 + $0x58] sm:$0xf] %vm186_vm0, %v3646_v0  ;;  %v3155_v7 = vcombine.low %v841_v5, %v794_v4  ;;  %v793_v8 = vld [vmem:[#allocation2] sm:$0xf] }
  0x23   : > { %212 = vst.msk [vmem:[#allocation2 + $0x60] sm:$0xf] %vm186_vm0, %v3646_v0  ;;  %213 = vst.msk [vmem:[#allocation2 + $0x64] sm:$0xf] %vm186_vm0, %v3646_v0  ;;  %v417_v9 = vshrl.u32 %v261_v1, 16  ;;  %v3796_v10 = vcombine.low %v793_v8, %v794_v4  ;;  %v420_v11 = vshll.u32 %v261_v1, 16 }
  0x24   : > { %214 = vst.msk [vmem:[#allocation2 + $0x68] sm:$0x1] %vm189_vm1, %v3646_v0  ;;  %217 = vst.msk [vmem:[#allocation2 + $0x74] sm:$0x1] %vm189_vm1, %v3646_v0  ;;  %v425_v12 = vshrl.u32 %v262_v2, 16  ;;  %v428_v13 = vshll.u32 %v262_v2, 16 }
  0x25   : > { %215 = vst.msk [vmem:[#allocation2 + $0x6c] sm:$0xf] %vm186_vm0, %v3646_v0  ;;  %216 = vst.msk [vmem:[#allocation2 + $0x70] sm:$0xf] %vm186_vm0, %v3646_v0  ;;  %v1388_v14 = vrot.slane %v3155_v7, 1  ;;  %v419_v17 = vrot.slane %v417_v9, 7 }
  0x26   : > { %218 = vst.msk [vmem:[#allocation2 + $0x78] sm:$0xf] %vm186_vm0, %v3646_v0  ;;  %219 = vst.msk [vmem:[#allocation2 + $0x7c] sm:$0xf] %vm186_vm0, %v3646_v0  ;;  %v1116_v19 = vshrl.u32 %v3796_v10, 16  ;;  %v1118_v20 = vshll.u32 %v3796_v10, 16 }
  0x27   : > { %220 = vst.msk [vmem:[#allocation2 + $0x80] sm:$0x1] %vm189_vm1, %v3646_v0  ;;  %223 = vst.msk [vmem:[#allocation2 + $0x8c] sm:$0x1] %vm189_vm1, %v3646_v0  ;;  %v3800_v21 = vrot.slane %v425_v12, 7  ;;  %v281_v24 = vshrl.u32 %v245_v3, 16  ;;  %v422_v28 = vor.u32 %v420_v11, %v419_v17 }
  0x28   : > { %221 = vst.msk [vmem:[#allocation2 + $0x84] sm:$0xf] %vm186_vm0, %v3646_v0  ;;  %222 = vst.msk [vmem:[#allocation2 + $0x88] sm:$0xf] %vm186_vm0, %v3646_v0  ;;  %v246_v23 = vld [vmem:[%s3791_s30 + $0x4] sm:$0xf] }
  0x29   : > { %224 = vst.msk [vmem:[#allocation2 + $0x90] sm:$0xf] %vm186_vm0, %v3646_v0  ;;  %225 = vst.msk [vmem:[#allocation2 + $0x94] sm:$0xf] %vm186_vm0, %v3646_v0  ;;  %v423_v29 = vrot.slane %v419_v17, 4  ;;  %v1120_v32 = vrot.slane %v1118_v20, 1  ;;  %v430_v33 = vor.u32 %v428_v13, %v3800_v21 }
  0x2a   : > { %226 = vst.msk [vmem:[#allocation2 + $0x98] sm:$0x1] %vm189_vm1, %v3646_v0  ;;  %229 = vst.msk [vmem:[#allocation2 + $0xa4] sm:$0x1] %vm189_vm1, %v3646_v0  ;;  %v604_v30 = vld [vmem:[#allocation2 + $0xc] sm:$0xf] }
  0x2b   : > { %227 = vst.msk [vmem:[#allocation2 + $0x9c] sm:$0xf] %vm186_vm0, %v3646_v0  ;;  %228 = vst.msk [vmem:[#allocation2 + $0xa0] sm:$0xf] %vm186_vm0, %v3646_v0  ;;  %v263_v31 = vld [vmem:[%s3791_s30 + $0x48] sm:$0xf]  ;;  %v1121_v42 = vor.u32 %v1120_v32, %v1116_v19 }
  0x2c   : > { %230 = vst.msk [vmem:[#allocation2 + $0xa8] sm:$0xf] %vm186_vm0, %v3646_v0  ;;  %231 = vst.msk [vmem:[#allocation2 + $0xac] sm:$0xf] %vm186_vm0, %v3646_v0  ;;  %v662_v18 = vld [vmem:[#allocation2 + $0x6c] sm:$0xf] }
  0x2d   : > { %232 = vst.msk [vmem:[#allocation2 + $0xb0] sm:$0x1] %vm189_vm1, %v3646_v0  ;;  %235 = vst.msk [vmem:[#allocation2 + $0xbc] sm:$0x1] %vm189_vm1, %v3646_v0  ;;  %v283_v34 = vrot.slane %v281_v24, 7  ;;  %v284_v35 = vshll.u32 %v245_v3, 16 }
  0x2e   : > { %233 = vst.msk [vmem:[#allocation2 + $0xb4] sm:$0xf] %vm186_vm0, %v3646_v0  ;;  %234 = vst.msk [vmem:[#allocation2 + $0xb8] sm:$0xf] %vm186_vm0, %v3646_v0  ;;  %v264_v36 = vld [vmem:[%s3791_s30 + $0x4c] sm:$0xf] }
  0x2f   : > { %236 = vst.msk [vmem:[#allocation2 + $0xc0] sm:$0xf] %vm186_vm0, %v3646_v0  ;;  %237 = vst.msk [vmem:[#allocation2 + $0xc4] sm:$0xf] %vm186_vm0, %v3646_v0  ;;  %v289_v38 = vshrl.u32 %v246_v23, 16  ;;  %v292_v39 = vshll.u32 %v246_v23, 16  ;;  %v286_v44 = vor.u32 %v284_v35, %v283_v34 }
  0x30   : > { %238 = vst.msk [vmem:[#allocation2 + $0xc8] sm:$0x1] %vm189_vm1, %v3646_v0  ;;  %241 = vst.msk [vmem:[#allocation2 + $0xd4] sm:$0x1] %vm189_vm1, %v3646_v0  ;;  %v434_v40 = vshrl.u32 %v263_v31, 16  ;;  %v287_v45 = vrot.slane %v283_v34, 4 }
  0x31   : > { %239 = vst.msk [vmem:[#allocation2 + $0xcc] sm:$0xf] %vm186_vm0, %v3646_v0  ;;  %240 = vst.msk [vmem:[#allocation2 + $0xd0] sm:$0xf] %vm186_vm0, %v3646_v0  ;;  %v247_v41 = vld [vmem:[%s3791_s30 + $0x8] sm:$0xf] }
  0x32   : > { %v3424_v6 = vld [vmem:[#allocation2 + $0x8] ss:$0 sps:$4 sm:$0x11]   ;;  %vm3804_vm7 = vmand %vm186_vm0, %vm602_vm5  ;;  %v291_v46 = vrot.slane %v289_v38, 7  ;;  %v436_v47 = vrot.slane %v434_v40, 7  ;;  %v437_v48 = vshll.u32 %v263_v31, 16 }
  0x33   : > { %v1389_v15 = vrot.slane %v3424_v6, 1  ;;  %v1123_v16 = vshll.u32 %v3424_v6, 16  ;;  %vm3812_vm8 = vmor %vm277_vm3, %vm278_vm4  ;;  %v663_v37 = vsel %vm3804_vm7, %v422_v28, %v662_v18  ;;  %v442_v49 = vshrl.u32 %v264_v36, 16  ;;  %v248_v50 = vld [vmem:[%s3791_s30 + $0xc] sm:$0xf]  ;;  %s3649_s6 = smov 12  }
  0x34   : > { %v431_v43 = vsel %vm3812_vm8, %v423_v29, %v430_v33  ;;  %664 = vst [vmem:[#allocation2 + $0x6c] sm:$0xf] %v663_v37  ;;  %v605_v52 = vsel %vm3804_vm7, %v286_v44, %v604_v30  ;;  %v445_v53 = vshll.u32 %v264_v36, 16  ;;  %v669_v54 = vld [vmem:[#allocation2 + $0x78] sm:$0xf]  ;;  %v298_v55 = vshrl.u32 %v247_v41, 16  ;;  %vm3843_vm9 = vmand %vm189_vm1, %vm277_vm3 }
  0x35   : > { %v1390_v25 = vsel %vm1387_vm2, %v1388_v14, %v1389_v15  ;;  %v1125_v26 = vrot.slane %v1123_v16, 1  ;;  %665 = vst.msk [vmem:[#allocation2 + $0x70] sm:$0xf] %vm186_vm0, %v431_v43  ;;  %v259_v56 = vld [vmem:[%s3791_s30 + $0x38] sm:$0xf]  ;;  %v294_v57 = vor.u32 %v292_v39, %v291_v46  ;;  %v439_v58 = vor.u32 %v437_v48, %v436_v47  ;;  %s3650_s7 = smov 16  }
  0x36   : > { %1436 = vrot.lane.b32.xlu0 %v1390_v25, %s3647_s4  ;;  %606 = vst [vmem:[#allocation2 + $0xc] sm:$0xf] %v605_v52  ;;  %v440_v59 = vrot.slane %v436_v47, 4  ;;  %v3832_v60 = vrot.slane %v442_v49, 7  ;;  %v300_v61 = vrot.slane %v298_v55, 7  ;;  %v301_v62 = vshll.u32 %v247_v41, 16 }
  0x37   : > { %v1126_v51 = vsel %vm1114_vm6, %v1121_v42, %v1125_v26  ;;  %v306_v63 = vshrl.u32 %v248_v50, 16  ;;  %v309_v0 = vshll.u32 %v248_v50, 16  ;;  %v260_v1 = vld [vmem:[%s3791_s30 + $0x3c] sm:$0xf]  ;;  %v295_v2 = vsel %vm3812_vm8, %v287_v45, %v294_v57  ;;  %v613_v5 = vld [vmem:[#allocation2 + $0x18] sm:$0xf] }
  0x38   : > { %v447_v3 = vor.u32 %v445_v53, %v3832_v60  ;;  %v670_v4 = vsel %vm3804_vm7, %v439_v58, %v669_v54  ;;  %v400_v6 = vshrl.u32 %v259_v56, 16  ;;  %607 = vst.msk [vmem:[#allocation2 + $0x10] sm:$0xf] %vm186_vm0, %v295_v2  ;;  %v303_v7 = vor.u32 %v301_v62, %v300_v61  ;;  %v610_v17 = vld [vmem:[#allocation2 + $0x14] sm:$0x1]  ;;  %s3651_s8 = smov 20  }
  0x39   : > { %671 = vst [vmem:[#allocation2 + $0x78] sm:$0xf] %v670_v4  ;;  %v304_v8 = vrot.slane %v300_v61, 4  ;;  %v308_v9 = vrot.slane %v306_v63, 7  ;;  %v403_v11 = vshll.u32 %v259_v56, 16  ;;  %v408_v16 = vshrl.u32 %v260_v1, 16 }
  0x3a   : > { %1307 = vrot.lane.b32.xlu0 %v1126_v51, %s3648_s5  ;;  %v448_v14 = vsel %vm3812_vm8, %v440_v59, %v447_v3  ;;  %v402_v15 = vrot.slane %v400_v6, 7  ;;  %v614_v20 = vsel %vm3804_vm7, %v303_v7, %v613_v5  ;;  %v411_v23 = vshll.u32 %v260_v1, 16  ;;  %v655_v24 = vld [vmem:[#allocation2 + $0x60] sm:$0xf]  ;;  %v666_v30 = vld [vmem:[#allocation2 + $0x74] sm:$0x1] }
  0x3b   : > { %v873_v13 = vld [vmem:[#allocation2 + $0x6c] sm:$0xf]  ;;  %672 = vst.msk [vmem:[#allocation2 + $0x7c] sm:$0xf] %vm186_vm0, %v448_v14  ;;  %v311_v19 = vor.u32 %v309_v0, %v308_v9  ;;  %v296_v25 = vrot.slane %v291_v46, 4  ;;  %v410_v32 = vrot.slane %v408_v16, 7 }
  0x3c   : > { %v3849_v18 = vld [vmem:[#allocation2 + $0x70] sm:$0xf]  ;;  %615 = vst [vmem:[#allocation2 + $0x18] sm:$0xf] %v614_v20  ;;  %v405_v28 = vor.u32 %v403_v11, %v402_v15  ;;  %v406_v29 = vrot.slane %v402_v15, 4  ;;  %v432_v34 = vrot.slane %v3800_v21, 4 }
  0x3d   : > { %v3855_v26 = vcombine.low %v873_v13, %v3849_v18  ;;  %v312_v31 = vsel %vm3812_vm8, %v304_v8, %v311_v19  ;;  %v611_v33 = vsel %vm3843_vm9, %v296_v25, %v610_v17  ;;  %v812_v35 = vld [vmem:[#allocation2 + $0x70] sm:$0xf]  ;;  %v850_v36 = vld [vmem:[#allocation2 + $0x6c] sm:$0xe]  ;;  %v659_v39 = vld [vmem:[#allocation2 + $0x68] sm:$0x1]  ;;  %v413_v41 = vor.u32 %v411_v23, %v410_v32 }
  0x3e   : > { %v857_v37 = vld [vmem:[#allocation2 + $0xc] sm:$0xf]  ;;  %616 = vst.msk [vmem:[#allocation2 + $0x1c] sm:$0xf] %vm186_vm0, %v312_v31  ;;  %v656_v38 = vsel %vm3804_vm7, %v405_v28, %v655_v24  ;;  %612 = vst [vmem:[#allocation2 + $0x14] sm:$0x1] %v611_v33  ;;  %v667_v44 = vsel %vm3843_vm9, %v432_v34, %v666_v30  ;;  %v3164_v48 = vcombine.low %v850_v36, %v812_v35 }
  0x3f   : > { %1564 = vrot.lane.b32.xlu1 %v3855_v26, %s3649_s6  ;;  %v617_v40 = vld [vmem:[#allocation2 + $0x20] sm:$0x1]  ;;  %v415_v42 = vrot.slane %v410_v32, 4  ;;  %657 = vst [vmem:[#allocation2 + $0x60] sm:$0xf] %v656_v38  ;;  %v313_v45 = vrot.slane %v308_v9, 4  ;;  %v414_v50 = vsel %vm3812_vm8, %v406_v29, %v413_v41 }
  0x40   : > { %v842_v43 = vld [vmem:[#allocation2 + $0xc] sm:$0xe]  ;;  %v3869_v46 = vld [vmem:[#allocation2 + $0x10] sm:$0xf]  ;;  %v875_v47 = vld [vmem:[#allocation2 + $0x78] sm:$0xf] }
  0x41   : > { %v795_v21 = vld [vmem:[#allocation2 + $0xc] sm:$0xf]  ;;  %668 = vst [vmem:[#allocation2 + $0x74] sm:$0x1] %v667_v44  ;;  %v3872_v49 = vcombine.low %v857_v37, %v3869_v46  ;;  %v660_v51 = vsel %vm3843_vm9, %v415_v42, %v659_v39  ;;  %v796_v52 = vld [vmem:[#allocation2 + $0x10] sm:$0xf]  ;;  %v618_v56 = vsel %vm3843_vm9, %v313_v45, %v617_v40 }
  0x42   : > { %v3878_v53 = vld [vmem:[#allocation2 + $0x7c] sm:$0xf]  ;;  %658 = vst.msk [vmem:[#allocation2 + $0x64] sm:$0xf] %vm186_vm0, %v414_v50  ;;  %661 = vst [vmem:[#allocation2 + $0x68] sm:$0x1] %v660_v51  ;;  %v3156_v54 = vcombine.low %v842_v43, %v796_v52  ;;  %v3881_v55 = vcombine.low %v795_v21, %v796_v52 }
  0x43   : > { %1548 = vrot.lane.b32.xlu0 %v3872_v49, %s3649_s6  ;;  %v3888_v57 = vcombine.low %v875_v47, %v3878_v53  ;;  %v859_v58 = vld [vmem:[#allocation2 + $0x18] sm:$0xf]  ;;  %v811_v59 = vld [vmem:[#allocation2 + $0x6c] sm:$0xf]  ;;  %619 = vst [vmem:[#allocation2 + $0x20] sm:$0x1] %v618_v56 }
  0x44   : > { %v1631_v61 = vshll.u32 %v3872_v49, 16  ;;  %v1415_v62 = vrot.slane %v3164_v48, 1  ;;  %v1130_v63 = vshll.u32 %v3881_v55, 16  ;;  %v1391_v1 = vrot.slane %v3156_v54, 1  ;;  %v905_v19 = vld [vmem:[#allocation2 + $0xc] sm:$0xe] }
  0x45   : > { %1566 = vrot.lane.b32.xlu1 %v3888_v57, %s3649_s6  ;;  %v3894_v0 = vld [vmem:[#allocation2 + $0x1c] sm:$0xf]  ;;  %v1629_v2 = vshrl.u32 %v3872_v49, 16  ;;  %v3898_v6 = vcombine.low %v811_v59, %v812_v35  ;;  %v3438_v7 = vld [vmem:[#allocation2 + $0x14] ss:$0 sps:$4 sm:$0x11]   ;;  %v3203_v47 = vcombine.low %v905_v19, %v3869_v46 }
  0x46   : > { %v3172_v3 = vcombine.low %v859_v58, %v3894_v0  ;;  %v849_v4 = vld [vmem:[#allocation2 + $0x60] sm:$0xe]  ;;  %v1128_v8 = vshrl.u32 %v3881_v55, 16  ;;  %v1132_v13 = vrot.slane %v1130_v63, 1  ;;  %v1392_v16 = vrot.slane %v3438_v7, 1  ;;  %s3652_s9 = smov 24  }
  0x47   : > { %v809_v5 = vld [vmem:[#allocation2 + $0x60] sm:$0xf]  ;;  %v1224_v14 = vshrl.u32 %v3898_v6, 16  ;;  %v1135_v17 = vshll.u32 %v3438_v7, 16  ;;  %v1226_v25 = vshll.u32 %v3898_v6, 16  ;;  %v1633_v31 = vrot.slane %v1631_v61, 1 }
  0x48   : > { %v1643_v9 = vshll.u32 %v3172_v3, 16  ;;  %1550 = vrot.lane.b32.xlu0 %v3172_v3, %s3649_s6  ;;  %v3442_v11 = vld [vmem:[#allocation2 + $0x74] ss:$0 sps:$4 sm:$0x11]   ;;  %v1393_v28 = vsel %vm1387_vm2, %v1391_v1, %v1392_v16  ;;  %v1641_v32 = vshrl.u32 %v3172_v3, 16  ;;  %v1133_v35 = vor.u32 %v1132_v13, %v1128_v8  ;;  %s3653_s21 = smov 28  }
  0x49   : > { %v810_v15 = vld [vmem:[#allocation2 + $0x64] sm:$0xf]  ;;  %v3435_v20 = vld [vmem:[#allocation2 + $0x68] ss:$0 sps:$4 sm:$0x11]   ;;  %v1416_v29 = vrot.slane %v3442_v11, 1  ;;  %v1634_v56 = vor.u32 %v1633_v31, %v1629_v2 }
  0x4a   : > { %v3163_v23 = vcombine.low %v849_v4, %v810_v15  ;;  %v3903_v24 = vcombine.low %v809_v5, %v810_v15  ;;  %v3444_v30 = vld [vmem:[#allocation2 + $0x14] ss:$0 sps:$4 sm:$0x11]   ;;  %v1413_v34 = vrot.slane %v3435_v20, 1  ;;  %v1137_v36 = vrot.slane %v1135_v17, 1  ;;  %s3654_s23 = smov 32  }
  0x4b   : > { %v3908_v37 = vld [vmem:[#allocation2 + $0x20] ss:$0 sps:$4 sm:$0x11]   ;;  %v1219_v40 = vshll.u32 %v3435_v20, 16  ;;  %v1636_v41 = vshll.u32 %v3444_v30, 16  ;;  %v1645_v43 = vrot.slane %v1643_v9, 1  ;;  %v1417_v50 = vsel %vm1387_vm2, %v1415_v62, %v1416_v29 }
  0x4c   : > { %v1412_v33 = vrot.slane %v3163_v23, 1  ;;  %1438 = vrot.lane.b32.xlu0 %v1393_v28, %s3647_s4  ;;  %v1212_v38 = vshrl.u32 %v3903_v24, 16  ;;  %v1214_v39 = vshll.u32 %v3903_v24, 16  ;;  %v1648_v21 = vshll.u32 %v3908_v37, 16  ;;  %v906_v59 = vld [vmem:[#allocation2 + $0x18] sm:$0xe] }
  0x4d   : > { %v1228_v44 = vrot.slane %v1226_v25, 1  ;;  %v1727_v45 = vshll.u32 %v3855_v26, 16  ;;  %v1221_v49 = vrot.slane %v1219_v40, 1  ;;  %v1231_v51 = vshll.u32 %v3442_v11, 16  ;;  %v673_v3 = vld [vmem:[#allocation2 + $0x80] sm:$0x1] }
  0x4e   : > { %v1414_v42 = vsel %vm1387_vm2, %v1412_v33, %v1413_v34  ;;  %v1216_v48 = vrot.slane %v1214_v39, 1  ;;  %v3918_v52 = vld [vmem:[#allocation2 + $0x74] ss:$0 sps:$4 sm:$0x11]   ;;  %v1638_v58 = vrot.slane %v1636_v41, 1  ;;  %v1138_v61 = vsel %vm1114_vm6, %v1133_v35, %v1137_v36  ;;  %s175_s28 = sand.u32 1, %s3628_s13  }
  0x4f   : > { %1452 = vrot.lane.b32.xlu1 %v1414_v42, %s3647_s4  ;;  %v1646_v63 = vor.u32 %v1645_v43, %v1641_v32  ;;  %v1650_v1 = vrot.slane %v1648_v21, 1  ;;  %v1229_v46 = vor.u32 %v1228_v44, %v1224_v14  ;;  %v1900_v62 = vrot.slane %v3203_v47, 1  ;;  %v249_v8 = vld [vmem:[%s3791_s30 + $0x10] sm:$0xf]  ;;  %v250_v14 = vld [vmem:[%s3791_s30 + $0x14] sm:$0xf] }
  0x50   : > { %v1217_v54 = vor.u32 %v1216_v48, %v1212_v38  ;;  %v1901_v5 = vrot.slane %v3444_v30, 1  ;;  %v1725_v7 = vshrl.u32 %v3855_v26, 16  ;;  %v1233_v2 = vrot.slane %v1231_v51, 1  ;;  %v265_v20 = vld [vmem:[%s3791_s30 + $0x50] sm:$0xf]  ;;  %s3116_s29 = sshll.u32 %s175_s28, 8 }
  0x51   : > { %v1729_v9 = vrot.slane %v1727_v45, 1  ;;  %v1732_v11 = vshll.u32 %v3918_v52, 16  ;;  %v449_v13 = vrot.slane %v3832_v60, 4  ;;  %v3204_v15 = vcombine.low %v906_v59, %v3894_v0  ;;  %v266_v29 = vld [vmem:[%s3791_s30 + $0x54] sm:$0xf]  ;;  %s3655_s19 = smov [#allocation3]  }
  0x52   : > { %v1222_v4 = vsel %vm1114_vm6, %v1217_v54, %v1221_v49  ;;  %v1639_v16 = vsel %vm1114_vm6, %v1634_v56, %v1638_v58  ;;  %v1739_v17 = vshll.u32 %v3888_v57, 16  ;;  %v1651_v19 = vsel %vm1114_vm6, %v1646_v63, %v1650_v1  ;;  %v620_v33 = vld [vmem:[#allocation2 + $0x24] sm:$0xf]  ;;  %v922_v36 = vld [vmem:[#allocation2 + $0x18] sm:$0xf] }
  0x53   : > { %1454 = vrot.lane.b32.xlu1 %v1417_v50, %s3647_s4  ;;  %1323 = vrot.lane.b32.xlu0 %v1222_v4, %s3648_s5  ;;  %v674_v26 = vsel %vm3843_vm9, %v449_v13, %v673_v3  ;;  %v1902_v23 = vsel %vm1387_vm2, %v1900_v62, %v1901_v5  ;;  %v315_v25 = vshrl.u32 %v249_v8, 16  ;;  %v318_v60 = vshll.u32 %v249_v8, 16  ;;  %v3943_v41 = vld [vmem:[#allocation2 + $0x1c] sm:$0xf]  ;;  %v913_v44 = vld [vmem:[#allocation2 + $0x6c] sm:$0xe] }
  0x54   : > { %675 = vst [vmem:[#allocation2 + $0x80] sm:$0x1] %v674_v26  ;;  %v323_v28 = vshrl.u32 %v250_v14, 16  ;;  %v1234_v0 = vsel %vm1114_vm6, %v1229_v46, %v1233_v2  ;;  %v1730_v30 = vor.u32 %v1729_v9, %v1725_v7  ;;  %v1734_v31 = vrot.slane %v1732_v11, 1  ;;  %v624_v50 = vld [vmem:[#allocation2 + $0x2c] sm:$0x1] }
  0x55   : > { %v326_v32 = vshll.u32 %v250_v14, 16  ;;  %v1903_v34 = vrot.slane %v3204_v15, 1  ;;  %v1904_v35 = vrot.slane %v3908_v37, 1  ;;  %v317_v38 = vrot.slane %v315_v25, 7  ;;  %v914_v56 = vld [vmem:[#allocation2 + $0x78] sm:$0xe] }
  0x56   : > { %v325_v39 = vrot.slane %v323_v28, 7  ;;  %v1737_v40 = vshrl.u32 %v3888_v57, 16  ;;  %v451_v42 = vshrl.u32 %v265_v20, 16  ;;  %v454_v43 = vshll.u32 %v265_v20, 16  ;;  %v676_v1 = vld [vmem:[#allocation2 + $0x84] sm:$0xf] }
  0x57   : > { %1309 = vrot.lane.b32.xlu1 %v1138_v61, %s3648_s5  ;;  %1820 = vrot.lane.b32.xlu0 %v1639_v16, %s3650_s7  ;;  %v459_v21 = vshrl.u32 %v266_v29, 16  ;;  %v1741_v45 = vrot.slane %v1739_v17, 1  ;;  %v320_v47 = vor.u32 %v318_v60, %v317_v38  ;;  %v321_v48 = vrot.slane %v317_v38, 4  ;;  %v938_v7 = vld [vmem:[#allocation2 + $0x78] sm:$0xf] }
  0x58   : > { %v328_v49 = vor.u32 %v326_v32, %v325_v39  ;;  %v1735_v37 = vsel %vm1114_vm6, %v1730_v30, %v1734_v31  ;;  %v330_v51 = vrot.slane %v325_v39, 4  ;;  %v453_v54 = vrot.slane %v451_v42, 7  ;;  %v3965_v11 = vld [vmem:[#allocation2 + $0x7c] sm:$0xf]  ;;  %v680_v20 = vld [vmem:[#allocation2 + $0x8c] sm:$0x1] }
  0x59   : > { %v461_v57 = vrot.slane %v459_v21, 7  ;;  %v3949_v58 = vcombine.low %v922_v36, %v3943_v41  ;;  %v621_v61 = vsel %vm3804_vm7, %v320_v47, %v620_v33  ;;  %v462_v63 = vshll.u32 %v266_v29, 16  ;;  %v3971_v16 = vld [vmem:[#allocation2 + $0x20] ss:$0 sps:$4 sm:$0x11]  }
  0x5a   : > { %v329_v59 = vsel %vm3812_vm8, %v321_v48, %v328_v49  ;;  %v3211_v46 = vcombine.low %v913_v44, %v3849_v18  ;;  %622 = vst [vmem:[#allocation2 + $0x24] sm:$0xf] %v621_v61  ;;  %v625_v4 = vsel %vm3843_vm9, %v330_v51, %v624_v50  ;;  %v456_v62 = vor.u32 %v454_v43, %v453_v54  ;;  %v3983_v30 = vld [vmem:[#allocation2 + $0x1c] sm:$0xf]  ;;  %v3518_v47 = vld [vmem:[%s5162_s1] sm:$0xff]  }
  0x5b   : > { %1325 = vrot.lane.b32.xlu1 %v1234_v0, %s3648_s5  ;;  %1822 = vrot.lane.b32.xlu0 %v1651_v19, %s3650_s7  ;;  %v3956_v3 = vld [vmem:[#allocation2 + $0x80] ss:$0 sps:$4 sm:$0x11]   ;;  %623 = vst.msk [vmem:[#allocation2 + $0x28] sm:$0xf] %vm186_vm0, %v329_v59  ;;  %v457_v5 = vrot.slane %v453_v54, 4  ;;  %v464_v8 = vor.u32 %v462_v63, %v461_v57  ;;  %v3212_v2 = vcombine.low %v914_v56, %v3878_v53 }
  0x5c   : > { %626 = vst [vmem:[#allocation2 + $0x2c] sm:$0x1] %v625_v4  ;;  %v1742_v18 = vor.u32 %v1741_v45, %v1737_v40  ;;  %v1744_v9 = vshll.u32 %v3956_v3, 16  ;;  %v677_v13 = vsel %vm3804_vm7, %v456_v62, %v676_v1  ;;  %v1905_v14 = vsel %vm1387_vm2, %v1903_v34, %v1904_v35  ;;  %v797_v0 = vld [vmem:[#allocation2 + $0x18] sm:$0xf]  ;;  %3313 = vmatprep.subr.bf16.mxu0 %v3518_v47 }
  0x5d   : > { %v2143_v15 = vshll.u32 %v3949_v58, 16  ;;  %v465_v53 = vsel %vm3812_vm8, %v457_v5, %v464_v8  ;;  %678 = vst [vmem:[#allocation2 + $0x84] sm:$0xf] %v677_v13  ;;  %v1924_v19 = vrot.slane %v3211_v46, 1  ;;  %v1925_v26 = vrot.slane %v3918_v52, 1  ;;  %3351 = vmatprep.subr.bf16.mxu1 %v3518_v47  ;;  %3314 = vmatpush3.bf16.msra.mxu0 %v3518_v47 }
  0x5e   : > { %v1746_v17 = vrot.slane %v1744_v9, 1  ;;  %679 = vst.msk [vmem:[#allocation2 + $0x88] sm:$0xf] %vm186_vm0, %v465_v53  ;;  %v466_v25 = vrot.slane %v461_v57, 4  ;;  %v1927_v28 = vrot.slane %v3212_v2, 1  ;;  %v2141_v29 = vshrl.u32 %v3949_v58, 16  ;;  %3354 = vmatpush3.bf16.msra.mxu1 %v3518_v47 }
  0x5f   : > { %1836 = vrot.lane.b32.xlu1 %v1735_v37, %s3650_s7  ;;  %1948 = vrot.lane.b32.xlu0 %v1902_v23, %s3651_s8  ;;  %v3978_v23 = vcombine.low %v938_v7, %v3965_v11  ;;  %v970_v52 = vld [vmem:[#allocation2 + $0x18] sm:$0xe]  ;;  %v2145_v33 = vrot.slane %v2143_v15, 1  ;;  %v2148_v34 = vshll.u32 %v3971_v16, 16  ;;  %v1926_v36 = vsel %vm1387_vm2, %v1924_v19, %v1925_v26  ;;  %v4025_v7 = vld [vmem:[#allocation2 + $0x7c] sm:$0xf] }
  0x60   : > { %v1747_v60 = vsel %vm1114_vm6, %v1742_v18, %v1746_v17  ;;  %v681_v35 = vsel %vm3843_vm9, %v466_v25, %v680_v20  ;;  %v1928_v39 = vrot.slane %v3956_v3, 1  ;;  %v3997_v43 = vld [vmem:[#allocation2 + $0x80] ss:$0 sps:$4 sm:$0x11]   ;;  %v4000_v21 = vcombine.low %v797_v0, %v3983_v30  ;;  %v978_v56 = vld [vmem:[#allocation2 + $0x78] sm:$0xe] }
  0x61   : > { %v924_v31 = vld [vmem:[#allocation2 + $0x24] sm:$0xf]  ;;  %682 = vst [vmem:[#allocation2 + $0x8c] sm:$0x1] %v681_v35  ;;  %v2239_v42 = vshll.u32 %v3978_v23, 16  ;;  %v2146_v48 = vor.u32 %v2145_v33, %v2141_v29  ;;  %v2150_v49 = vrot.slane %v2148_v34, 1  ;;  %v3251_v54 = vcombine.low %v970_v52, %v3943_v41 }
  0x62   : > { %v3986_v32 = vld [vmem:[#allocation2 + $0x28] sm:$0xf]  ;;  %v1929_v57 = vsel %vm1387_vm2, %v1927_v28, %v1928_v39  ;;  %v4016_v61 = vld [vmem:[#allocation2 + $0x20] ss:$0 sps:$4 sm:$0x11]   ;;  %v2237_v63 = vshrl.u32 %v3978_v23, 16  ;;  %v3259_v13 = vcombine.low %v978_v56, %v3965_v11 }
  0x63   : > { %1950 = vrot.lane.b32.xlu0 %v1905_v14, %s3651_s8  ;;  %1838 = vrot.lane.b32.xlu1 %v1747_v60, %s3650_s7  ;;  %v3220_v38 = vcombine.low %v924_v31, %v3986_v32  ;;  %v3994_v40 = vld [vmem:[#allocation2 + $0x2c] ss:$0 sps:$4 sm:$0x11]   ;;  %v2241_v1 = vrot.slane %v2239_v42, 1  ;;  %v2244_v46 = vshll.u32 %v3997_v43, 16  ;;  %v1142_v3 = vshll.u32 %v4000_v21, 16 }
  0x64   : > { %v940_v45 = vld [vmem:[#allocation2 + $0x84] sm:$0xf]  ;;  %v2160_v37 = vshll.u32 %v3994_v40, 16  ;;  %v813_v4 = vld [vmem:[#allocation2 + $0x78] sm:$0xf]  ;;  %v3521_v41 = vld [vmem:[%s5162_s1 + $0x8] sm:$0xff]   ;;  %v2151_v8 = vsel %vm1114_vm6, %v2146_v48, %v2150_v49 }
  0x65   : > { %v2155_v44 = vshll.u32 %v3220_v38, 16  ;;  %v2153_v50 = vshrl.u32 %v3220_v38, 16  ;;  %v4009_v51 = vld [vmem:[#allocation2 + $0x88] sm:$0xf]  ;;  %v971_v62 = vld [vmem:[#allocation2 + $0x24] sm:$0xe]  ;;  %3315 = vmatprep.subr.bf16.mxu0 %v3521_v41  ;;  %3352 = vmatprep.subr.bf16.mxu1 %v3521_v41  ;;  %v2242_v19 = vor.u32 %v2241_v1, %v2237_v63  ;;  %v4044_v28 = vcombine.low %v813_v4, %v4025_v7 }
  0x66   : > { %v4014_v59 = vcombine.low %v940_v45, %v4009_v51  ;;  %v799_v5 = vld [vmem:[#allocation2 + $0x24] sm:$0xf]  ;;  %v2162_v18 = vrot.slane %v2160_v37, 1  ;;  %v4029_v9 = vld [vmem:[#allocation2 + $0x28] sm:$0xf]  ;;  %v2412_v15 = vrot.slane %v3251_v54, 1  ;;  %3316 = vmatpush3.bf16.msra.mxu0 %v3521_v41  ;;  %3355 = vmatpush3.bf16.msra.mxu1 %v3521_v41  ;;  %v3252_v60 = vcombine.low %v971_v62, %v3986_v32 }
  0x67   : > { %2060 = vrot.lane.b32.xlu0 %v3949_v58, %s3652_s9  ;;  %1964 = vrot.lane.b32.xlu1 %v1926_v36, %s3651_s8  ;;  %v2157_v58 = vrot.slane %v2155_v44, 1  ;;  %v2413_v53 = vrot.slane %v3971_v16, 1  ;;  %v2246_v26 = vrot.slane %v2244_v46, 1  ;;  %v1140_v20 = vshrl.u32 %v4000_v21, 16  ;;  %v251_v39 = vld [vmem:[%s3791_s30 + $0x18] sm:$0xf] }
  0x68   : > { %v2251_v14 = vshll.u32 %v4014_v59, 16  ;;  %v4034_v17 = vld [vmem:[#allocation2 + $0x8c] ss:$0 sps:$4 sm:$0x11]   ;;  %v1144_v25 = vrot.slane %v1142_v3, 1  ;;  %v1147_v11 = vshll.u32 %v4016_v61, 16  ;;  %v4041_v16 = vcombine.low %v799_v5, %v4029_v9 }
  0x69   : > { %v2158_v2 = vor.u32 %v2157_v58, %v2153_v50  ;;  %v4049_v0 = vld [vmem:[#allocation2 + $0x2c] ss:$0 sps:$4 sm:$0x11]   ;;  %v2414_v52 = vsel %vm1387_vm2, %v2412_v15, %v2413_v53  ;;  %v2249_v31 = vshrl.u32 %v4014_v59, 16  ;;  %v2256_v33 = vshll.u32 %v4034_v17, 16 }
  0x6a   : > { %v2253_v32 = vrot.slane %v2251_v14, 1  ;;  %v4054_v34 = vld [vmem:[#allocation2 + $0x80] ss:$0 sps:$4 sm:$0x11]   ;;  %v2247_v35 = vsel %vm1114_vm6, %v2242_v19, %v2246_v26  ;;  %v1145_v36 = vor.u32 %v1144_v25, %v1140_v20  ;;  %v1149_v42 = vrot.slane %v1147_v11, 1 }
  0x6b   : > { %2062 = vrot.lane.b32.xlu0 %v3220_v38, %s3652_s9  ;;  %1966 = vrot.lane.b32.xlu1 %v1929_v57, %s3651_s8  ;;  %v2163_v29 = vsel %vm1114_vm6, %v2158_v2, %v2162_v18  ;;  %v2436_v38 = vrot.slane %v3259_v13, 1  ;;  %v2415_v44 = vrot.slane %v3252_v60, 1  ;;  %v1154_v45 = vshll.u32 %v4041_v16, 16  ;;  %v252_v48 = vld [vmem:[%s3791_s30 + $0x1c] sm:$0xf] }
  0x6c   : > { %v1238_v47 = vshll.u32 %v4044_v28, 16  ;;  %v2416_v49 = vrot.slane %v3994_v40, 1  ;;  %v1152_v50 = vshrl.u32 %v4041_v16, 16  ;;  %v1159_v37 = vshll.u32 %v4049_v0, 16  ;;  %v843_v54 = vld [vmem:[#allocation2 + $0x18] sm:$0xe] }
  0x6d   : > { %v2254_v57 = vor.u32 %v2253_v32, %v2249_v31  ;;  %v2258_v56 = vrot.slane %v2256_v33, 1  ;;  %v815_v58 = vld [vmem:[#allocation2 + $0x84] sm:$0xf]  ;;  %v332_v63 = vshrl.u32 %v251_v39, 16  ;;  %v335_v1 = vshll.u32 %v251_v39, 16 }
  0x6e   : > { %v4069_v46 = vld [vmem:[#allocation2 + $0x88] sm:$0xf]  ;;  %v340_v3 = vshrl.u32 %v252_v48, 16  ;;  %v343_v4 = vshll.u32 %v252_v48, 16  ;;  %v979_v41 = vld [vmem:[#allocation2 + $0x84] sm:$0xe]  ;;  %v3157_v18 = vcombine.low %v843_v54, %v3983_v30  ;;  %v2417_v60 = vsel %vm1387_vm2, %v2415_v44, %v2416_v49 }
  0x6f   : > { %2332 = vrot.lane.b32.xlu0 %v2151_v8, %s3653_s21  ;;  %2076 = vrot.lane.b32.xlu1 %v3978_v23, %s3652_s9  ;;  %v2437_v23 = vrot.slane %v3997_v43, 1  ;;  %v1236_v43 = vshrl.u32 %v4044_v28, 16  ;;  %v1156_v40 = vrot.slane %v1154_v45, 1  ;;  %v1243_v62 = vshll.u32 %v4054_v34, 16  ;;  %v627_v14 = vld [vmem:[#allocation2 + $0x30] sm:$0xf] }
  0x70   : > { %v334_v5 = vrot.slane %v332_v63, 7  ;;  %v1150_v8 = vsel %vm1114_vm6, %v1145_v36, %v1149_v42  ;;  %v342_v13 = vrot.slane %v340_v3, 7  ;;  %v2259_v15 = vsel %vm1114_vm6, %v2254_v57, %v2258_v56  ;;  %v267_v20 = vld [vmem:[%s3791_s30 + $0x58] sm:$0xf]  ;;  %v268_v31 = vld [vmem:[%s3791_s30 + $0x5c] sm:$0xf] }
  0x71   : > { %v2438_v2 = vsel %vm1387_vm2, %v2436_v38, %v2437_v23  ;;  %v4079_v53 = vcombine.low %v815_v58, %v4069_v46  ;;  %v3260_v25 = vcombine.low %v979_v41, %v4009_v51  ;;  %v1161_v11 = vrot.slane %v1159_v37, 1  ;;  %v631_v36 = vld [vmem:[#allocation2 + $0x38] sm:$0x1]  ;;  %v4089_v38 = vld [vmem:[#allocation2 + $0x8c] ss:$0 sps:$4 sm:$0x11]  }
  0x72   : > { %v337_v19 = vor.u32 %v335_v1, %v334_v5  ;;  %v338_v26 = vrot.slane %v334_v5, 4  ;;  %v1157_v30 = vor.u32 %v1156_v40, %v1152_v50  ;;  %v1245_v33 = vrot.slane %v1243_v62, 1  ;;  %v683_v50 = vld [vmem:[#allocation2 + $0x90] sm:$0xf]  ;;  %v687_v56 = vld [vmem:[#allocation2 + $0x98] sm:$0x1] }
  0x73   : > { %2334 = vrot.lane.b32.xlu0 %v2163_v29, %s3653_s21  ;;  %2078 = vrot.lane.b32.xlu1 %v4014_v59, %s3652_s9  ;;  %v1240_v59 = vrot.slane %v1238_v47, 1  ;;  %5178 = vst [vmem:[#allocation6_spill] sm:$0xff] %v4079_v53  ;;  %v844_v29 = vld [vmem:[#allocation2 + $0x24] sm:$0xe]  ;;  %v347_v23 = vrot.slane %v342_v13, 4  ;;  %v468_v39 = vshrl.u32 %v267_v20, 16 }
  0x74   : > { %v471_v42 = vshll.u32 %v267_v20, 16  ;;  %v3158_v44 = vcombine.low %v844_v29, %v4029_v9  ;;  %v1250_v45 = vshll.u32 %v4079_v53, 16  ;;  %v851_v47 = vld [vmem:[#allocation2 + $0x78] sm:$0xe]  ;;  %v476_v48 = vshrl.u32 %v268_v31, 16 }
  0x75   : > { %v1241_v32 = vor.u32 %v1240_v59, %v1236_v43  ;;  %v479_v49 = vshll.u32 %v268_v31, 16  ;;  %v1394_v37 = vrot.slane %v3157_v18, 1  ;;  %v1395_v43 = vrot.slane %v4016_v61, 1  ;;  %v253_v3 = vld [vmem:[%s3791_s30 + $0x20] sm:$0xf] }
  0x76   : > { %v632_v54 = vsel %vm3843_vm9, %v347_v23, %v631_v36  ;;  %v470_v57 = vrot.slane %v468_v39, 7  ;;  %v1162_v9 = vsel %vm1114_vm6, %v1157_v30, %v1161_v11  ;;  %v2439_v58 = vrot.slane %v3260_v25, 1  ;;  %v861_v41 = vld [vmem:[#allocation2 + $0x24] sm:$0xf]  ;;  %v4106_v40 = vld [vmem:[#allocation2 + $0x28] sm:$0xf] }
  0x77   : > { %2460 = vrot.lane.b32.xlu0 %v2414_v52, %s3654_s23  ;;  %2348 = vrot.lane.b32.xlu1 %v2247_v35, %s3653_s21  ;;  %v345_v52 = vor.u32 %v343_v4, %v342_v13  ;;  %v628_v35 = vsel %vm3804_vm7, %v337_v19, %v627_v14  ;;  %v2440_v63 = vrot.slane %v4034_v17, 1  ;;  %633 = vst [vmem:[#allocation2 + $0x38] sm:$0x1] %v632_v54  ;;  %v478_v1 = vrot.slane %v476_v48, 7  ;;  %v852_v11 = vld [vmem:[#allocation2 + $0x84] sm:$0xe] }
  0x78   : > { %629 = vst [vmem:[#allocation2 + $0x30] sm:$0xf] %v628_v35  ;;  %v1246_v4 = vsel %vm1114_vm6, %v1241_v32, %v1245_v33  ;;  %v1255_v61 = vshll.u32 %v4089_v38, 16  ;;  %v473_v59 = vor.u32 %v471_v42, %v470_v57  ;;  %v474_v62 = vrot.slane %v470_v57, 4  ;;  %v877_v29 = vld [vmem:[#allocation2 + $0x84] sm:$0xf] }
  0x79   : > { %v346_v51 = vsel %vm3812_vm8, %v338_v26, %v345_v52  ;;  %v1248_v5 = vshrl.u32 %v4079_v53, 16  ;;  %v481_v18 = vor.u32 %v479_v49, %v478_v1  ;;  %v483_v13 = vrot.slane %v478_v1, 4  ;;  %v4125_v33 = vld [vmem:[#allocation2 + $0x2c] ss:$0 sps:$4 sm:$0x11]  }
  0x7a   : > { %630 = vst.msk [vmem:[#allocation2 + $0x34] sm:$0xf] %vm186_vm0, %v346_v51  ;;  %v1397_v17 = vrot.slane %v3158_v44, 1  ;;  %v3165_v14 = vcombine.low %v851_v47, %v4025_v7  ;;  %v1398_v19 = vrot.slane %v4049_v0, 1  ;;  %v3173_v26 = vcombine.low %v861_v41, %v4106_v40  ;;  %v4127_v35 = vld [vmem:[#allocation2 + $0x88] sm:$0xf] }
  0x7b   : > { %1311 = vrot.lane.b32.xlu0 %v1150_v8, %s3648_s5  ;;  %2350 = vrot.lane.b32.xlu1 %v2259_v15, %s3653_s21  ;;  %v1252_v8 = vrot.slane %v1250_v45, 1  ;;  %v349_v15 = vshrl.u32 %v253_v3, 16  ;;  %v482_v20 = vsel %vm3812_vm8, %v474_v62, %v481_v18  ;;  %v688_v25 = vsel %vm3843_vm9, %v483_v13, %v687_v56  ;;  %v254_v36 = vld [vmem:[%s3791_s30 + $0x24] sm:$0xf]  ;;  %v634_v44 = vld [vmem:[#allocation2 + $0x3c] sm:$0xf] }
  0x7c   : > { %v1396_v7 = vsel %vm1387_vm2, %v1394_v37, %v1395_v43  ;;  %686 = vst.msk [vmem:[#allocation2 + $0x94] sm:$0xf] %vm186_vm0, %v482_v20  ;;  %689 = vst [vmem:[#allocation2 + $0x98] sm:$0x1] %v688_v25  ;;  %v352_v0 = vshll.u32 %v253_v3, 16  ;;  %v2441_v52 = vsel %vm1387_vm2, %v2439_v58, %v2440_v63  ;;  %v1399_v23 = vsel %vm1387_vm2, %v1397_v17, %v1398_v19 }
  0x7d   : > { %v1253_v31 = vor.u32 %v1252_v8, %v1248_v5  ;;  %v351_v51 = vrot.slane %v349_v15, 7  ;;  %v1655_v39 = vshll.u32 %v3173_v26, 16  ;;  %v1418_v42 = vrot.slane %v3165_v14, 1  ;;  %v638_v8 = vld [vmem:[#allocation2 + $0x44] sm:$0x1] }
  0x7e   : > { %v1419_v45 = vrot.slane %v4054_v34, 1  ;;  %v3166_v48 = vcombine.low %v852_v11, %v4069_v46  ;;  %v4138_v37 = vcombine.low %v877_v29, %v4127_v35  ;;  %v357_v43 = vshrl.u32 %v254_v36, 16  ;;  %v4148_v41 = vld [vmem:[#allocation2 + $0x38] ss:$0 sps:$4 sm:$0x11]  }
  0x7f   : > { %2462 = vrot.lane.b32.xlu0 %v2417_v60, %s3654_s23  ;;  %2476 = vrot.lane.b32.xlu1 %v2438_v2, %s3654_s23  ;;  %v684_v2 = vsel %vm3804_vm7, %v473_v59, %v683_v50  ;;  %v1257_v60 = vrot.slane %v1255_v61, 1  ;;  %v863_v30 = vld [vmem:[#allocation2 + $0x30] sm:$0xf]  ;;  %v354_v49 = vor.u32 %v352_v0, %v351_v51  ;;  %v360_v54 = vshll.u32 %v254_v36, 16  ;;  %v270_v19 = vld [vmem:[%s3791_s30 + $0x64] sm:$0xf] }
  0x80   : > { %685 = vst [vmem:[#allocation2 + $0x90] sm:$0xf] %v684_v2  ;;  %v1653_v57 = vshrl.u32 %v3173_v26, 16  ;;  %v1657_v34 = vrot.slane %v1655_v39, 1  ;;  %v1660_v58 = vshll.u32 %v4125_v33, 16  ;;  %v355_v63 = vrot.slane %v351_v51, 4 }
  0x81   : > { %v4123_v32 = vld [vmem:[#allocation2 + $0x34] sm:$0xf]  ;;  %v1258_v50 = vsel %vm1114_vm6, %v1253_v31, %v1257_v60  ;;  %v635_v56 = vsel %vm3804_vm7, %v354_v49, %v634_v44  ;;  %v359_v46 = vrot.slane %v357_v43, 7  ;;  %v1420_v1 = vsel %vm1387_vm2, %v1418_v42, %v1419_v45  ;;  %v4164_v29 = vld [vmem:[#allocation2 + $0x8c] ss:$0 sps:$4 sm:$0x11]  }
  0x82   : > { %v3174_v47 = vcombine.low %v863_v30, %v4123_v32  ;;  %636 = vst [vmem:[#allocation2 + $0x3c] sm:$0xf] %v635_v56  ;;  %v1422_v61 = vrot.slane %v4089_v38, 1  ;;  %v1751_v59 = vshll.u32 %v4138_v37, 16  ;;  %v1658_v14 = vor.u32 %v1657_v34, %v1653_v57  ;;  %v907_v38 = vld [vmem:[#allocation2 + $0x24] sm:$0xe] }
  0x83   : > { %1313 = vrot.lane.b32.xlu0 %v1162_v9, %s3648_s5  ;;  %1327 = vrot.lane.b32.xlu1 %v1246_v4, %s3648_s5  ;;  %v269_v9 = vld [vmem:[%s3791_s30 + $0x60] sm:$0xf]  ;;  %v1421_v4 = vrot.slane %v3166_v48, 1  ;;  %v362_v62 = vor.u32 %v360_v54, %v359_v46  ;;  %v364_v5 = vrot.slane %v359_v46, 4  ;;  %v4151_v17 = vld [vmem:[#allocation2 + $0x94] sm:$0xf]  ;;  %v3205_v39 = vcombine.low %v907_v38, %v4106_v40 }
  0x84   : > { %v1667_v3 = vshll.u32 %v3174_v47, 16  ;;  %v485_v18 = vshrl.u32 %v269_v9, 16  ;;  %v1662_v2 = vrot.slane %v1660_v58, 1  ;;  %v1665_v20 = vshrl.u32 %v3174_v47, 16  ;;  %v908_v42 = vld [vmem:[#allocation2 + $0x30] sm:$0xe] }
  0x85   : > { %v363_v15 = vsel %vm3812_vm8, %v355_v63, %v362_v62  ;;  %v639_v60 = vsel %vm3843_vm9, %v364_v5, %v638_v8  ;;  %v1749_v31 = vshrl.u32 %v4138_v37, 16  ;;  %v1753_v30 = vrot.slane %v1751_v59, 1  ;;  %v926_v45 = vld [vmem:[#allocation2 + $0x30] sm:$0xf]  ;;  %v4170_v48 = vld [vmem:[#allocation2 + $0x34] sm:$0xf] }
  0x86   : > { %v1669_v25 = vrot.slane %v1667_v3, 1  ;;  %637 = vst.msk [vmem:[#allocation2 + $0x40] sm:$0xf] %vm186_vm0, %v363_v15  ;;  %640 = vst [vmem:[#allocation2 + $0x44] sm:$0x1] %v639_v60  ;;  %v487_v0 = vrot.slane %v485_v18, 7  ;;  %v1663_v44 = vsel %vm1114_vm6, %v1658_v14, %v1662_v2  ;;  %v3206_v63 = vcombine.low %v908_v42, %v4123_v32 }
  0x87   : > { %1440 = vrot.lane.b32.xlu0 %v1396_v7, %s3647_s4  ;;  %2478 = vrot.lane.b32.xlu1 %v2441_v52, %s3654_s23  ;;  %v879_v13 = vld [vmem:[#allocation2 + $0x90] sm:$0xf]  ;;  %v1672_v7 = vshll.u32 %v4148_v41, 16  ;;  %v488_v52 = vshll.u32 %v269_v9, 16  ;;  %v493_v36 = vshrl.u32 %v270_v19, 16  ;;  %v496_v51 = vshll.u32 %v270_v19, 16 }
  0x88   : > { %v3182_v11 = vcombine.low %v879_v13, %v4151_v17  ;;  %v491_v54 = vrot.slane %v487_v0, 4  ;;  %v1756_v9 = vshll.u32 %v4164_v29, 16  ;;  %v4174_v34 = vld [vmem:[#allocation2 + $0x98] ss:$0 sps:$4 sm:$0x11]   ;;  %v1906_v46 = vrot.slane %v3205_v39, 1 }
  0x89   : > { %v490_v49 = vor.u32 %v488_v52, %v487_v0  ;;  %v1674_v43 = vrot.slane %v1672_v7, 1  ;;  %v495_v57 = vrot.slane %v493_v36, 7  ;;  %v694_v3 = vld [vmem:[#allocation2 + $0xa4] sm:$0x1]  ;;  %v915_v5 = vld [vmem:[#allocation2 + $0x84] sm:$0xe] }
  0x8a   : > { %v1763_v56 = vshll.u32 %v3182_v11, 16  ;;  %v1758_v8 = vrot.slane %v1756_v9, 1  ;;  %v1761_v18 = vshrl.u32 %v3182_v11, 16  ;;  %v1768_v13 = vshll.u32 %v4174_v34, 16  ;;  %v916_v19 = vld [vmem:[#allocation2 + $0x90] sm:$0xe] }
  0x8b   : > { %1442 = vrot.lane.b32.xlu0 %v1399_v23, %s3647_s4  ;;  %1329 = vrot.lane.b32.xlu1 %v1258_v50, %s3648_s5  ;;  %v690_v23 = vld [vmem:[#allocation2 + $0x9c] sm:$0xf]  ;;  %v1670_v50 = vor.u32 %v1669_v25, %v1665_v20  ;;  %v498_v58 = vor.u32 %v496_v51, %v495_v57  ;;  %v500_v62 = vrot.slane %v495_v57, 4  ;;  %v4192_v14 = vld [vmem:[#allocation2 + $0x38] ss:$0 sps:$4 sm:$0x11]   ;;  %v3213_v7 = vcombine.low %v915_v5, %v4127_v35 }
  0x8c   : > { %v691_v40 = vsel %vm3804_vm7, %v490_v49, %v690_v23  ;;  %v1765_v32 = vrot.slane %v1763_v56, 1  ;;  %v1909_v2 = vrot.slane %v3206_v63, 1  ;;  %v1910_v15 = vrot.slane %v4148_v41, 1  ;;  %v928_v20 = vld [vmem:[#allocation2 + $0x3c] sm:$0xf] }
  0x8d   : > { %692 = vst [vmem:[#allocation2 + $0x9c] sm:$0xf] %v691_v40  ;;  %v499_v59 = vsel %vm3812_vm8, %v491_v54, %v498_v58  ;;  %v4200_v25 = vld [vmem:[#allocation2 + $0x40] sm:$0xf]  ;;  %v1770_v0 = vrot.slane %v1768_v13, 1  ;;  %v2172_v36 = vshll.u32 %v4192_v14, 16  ;;  %v3214_v51 = vcombine.low %v916_v19, %v4151_v17 }
  0x8e   : > { %693 = vst.msk [vmem:[#allocation2 + $0xa0] sm:$0xf] %vm186_vm0, %v499_v59  ;;  %v942_v52 = vld [vmem:[#allocation2 + $0x90] sm:$0xf]  ;;  %v1911_v35 = vsel %vm1387_vm2, %v1909_v2, %v1910_v15  ;;  %v4218_v54 = vld [vmem:[#allocation2 + $0x34] sm:$0xf] }
  0x8f   : > { %1552 = vrot.lane.b32.xlu0 %v3173_v26, %s3649_s6  ;;  %1456 = vrot.lane.b32.xlu1 %v1420_v1, %s3647_s4  ;;  %v1423_v26 = vsel %vm1387_vm2, %v1421_v4, %v1422_v61  ;;  %v1907_v1 = vrot.slane %v4125_v33, 1  ;;  %v1675_v4 = vsel %vm1114_vm6, %v1670_v50, %v1674_v43  ;;  %v1754_v61 = vor.u32 %v1753_v30, %v1749_v31  ;;  %v4204_v31 = vld [vmem:[#allocation2 + $0x94] sm:$0xf]  ;;  %v972_v42 = vld [vmem:[#allocation2 + $0x30] sm:$0xe] }
  0x90   : > { %v4214_v23 = vcombine.low %v942_v52, %v4204_v31  ;;  %v801_v49 = vld [vmem:[#allocation2 + $0x30] sm:$0xf]  ;;  %v2174_v43 = vrot.slane %v2172_v36, 1  ;;  %v4221_v57 = vld [vmem:[#allocation2 + $0x44] ss:$0 sps:$4 sm:$0x11]   ;;  %v3253_v56 = vcombine.low %v972_v42, %v4170_v48 }
  0x91   : > { %v1908_v38 = vsel %vm1387_vm2, %v1906_v46, %v1907_v1  ;;  %v1759_v60 = vsel %vm1114_vm6, %v1754_v61, %v1758_v8  ;;  %v1933_v9 = vrot.slane %v3214_v51, 1  ;;  %v1934_v40 = vrot.slane %v4174_v34, 1  ;;  %v4228_v46 = vld [vmem:[#allocation2 + $0x98] ss:$0 sps:$4 sm:$0x11]  }
  0x92   : > { %v2263_v58 = vshll.u32 %v4214_v23, 16  ;;  %v4230_v1 = vld [vmem:[#allocation2 + $0x38] ss:$0 sps:$4 sm:$0x11]   ;;  %v2184_v8 = vshll.u32 %v4221_v57, 16  ;;  %v2418_v13 = vrot.slane %v3253_v56, 1 }
  0x93   : > { %1554 = vrot.lane.b32.xlu0 %v3174_v47, %s3649_s6  ;;  %1458 = vrot.lane.b32.xlu1 %v1423_v26, %s3647_s4  ;;  %v4179_v47 = vcombine.low %v926_v45, %v4170_v48  ;;  %v1766_v26 = vor.u32 %v1765_v32, %v1761_v18  ;;  %v1931_v45 = vrot.slane %v4164_v29, 1  ;;  %v980_v29 = vld [vmem:[#allocation2 + $0x90] sm:$0xe]  ;;  %v4237_v48 = vcombine.low %v801_v49, %v4218_v54  ;;  %v256_v18 = vld [vmem:[%s3791_s30 + $0x2c] sm:$0xf] }
  0x94   : > { %v944_v61 = vld [vmem:[#allocation2 + $0x9c] sm:$0xf]  ;;  %v3261_v34 = vcombine.low %v980_v29, %v4204_v31  ;;  %v2265_v2 = vrot.slane %v2263_v58, 1  ;;  %v1935_v15 = vsel %vm1387_vm2, %v1933_v9, %v1934_v40  ;;  %v2268_v19 = vshll.u32 %v4228_v46, 16  ;;  %v641_v56 = vld [vmem:[#allocation2 + $0x48] sm:$0xf] }
  0x95   : > { %v2167_v33 = vshll.u32 %v4179_v47, 16  ;;  %v2165_v41 = vshrl.u32 %v4179_v47, 16  ;;  %v1771_v39 = vsel %vm1114_vm6, %v1766_v26, %v1770_v0  ;;  %v4234_v59 = vld [vmem:[#allocation2 + $0xa0] sm:$0xf]  ;;  %5179 = vst [vmem:[#allocation7_spill] sm:$0xff] %v4237_v48  ;;  %v1166_v26 = vshll.u32 %v4237_v48, 16 }
  0x96   : > { %v374_v36 = vshrl.u32 %v256_v18, 16  ;;  %v377_v51 = vshll.u32 %v256_v18, 16  ;;  %v272_v18 = vld [vmem:[%s3791_s30 + $0x6c] sm:$0xf]  ;;  %vm2492_vm11 = vcmask 31744   ;;  %vm2525_vm12 = vcmask 64512  }
  0x97   : > { %1824 = vrot.lane.b32.xlu0 %v1663_v44, %s3650_s7  ;;  %1568 = vrot.lane.b32.xlu1 %v4138_v37, %s3649_s6  ;;  %v695_v37 = vsel %vm3843_vm9, %v500_v62, %v694_v3  ;;  %v2169_v30 = vrot.slane %v2167_v33, 1  ;;  %v1930_v44 = vrot.slane %v3213_v7, 1  ;;  %v255_v3 = vld [vmem:[%s3791_s30 + $0x28] sm:$0xf]  ;;  %v2419_v33 = vrot.slane %v4192_v14, 1 }
  0x98   : > { %696 = vst [vmem:[#allocation2 + $0xa4] sm:$0x1] %v695_v37  ;;  %v2261_v37 = vshrl.u32 %v4214_v23, 16  ;;  %v4255_v7 = vld [vmem:[#allocation2 + $0x94] sm:$0xf]  ;;  %v1171_v14 = vshll.u32 %v4230_v1, 16 }
  0x99   : > { %v2170_v50 = vor.u32 %v2169_v30, %v2165_v41  ;;  %v1932_v63 = vsel %vm1387_vm2, %v1930_v44, %v1931_v45  ;;  %v366_v0 = vshrl.u32 %v255_v3, 16  ;;  %v369_v52 = vshll.u32 %v255_v3, 16  ;;  %v803_v30 = vld [vmem:[#allocation2 + $0x3c] sm:$0xf]  ;;  %v4266_v44 = vld [vmem:[#allocation2 + $0x40] sm:$0xf] }
  0x9a   : > { %v2186_v41 = vrot.slane %v2184_v8, 1  ;;  %v1168_v40 = vrot.slane %v1166_v26, 1  ;;  %v1173_v29 = vrot.slane %v1171_v14, 1  ;;  %v271_v3 = vld [vmem:[%s3791_s30 + $0x68] sm:$0xf]  ;;  %v510_v26 = vshrl.u32 %v272_v18, 16 }
  0x9b   : > { %1826 = vrot.lane.b32.xlu0 %v1675_v4, %s3650_s7  ;;  %1570 = vrot.lane.b32.xlu1 %v3182_v11, %s3649_s6  ;;  %v3222_v11 = vcombine.low %v928_v20, %v4200_v25  ;;  %v2175_v4 = vsel %vm1114_vm6, %v2170_v50, %v2174_v43  ;;  %v817_v20 = vld [vmem:[#allocation2 + $0x90] sm:$0xf]  ;;  %v2270_v43 = vrot.slane %v2268_v19, 1  ;;  %v505_v19 = vshll.u32 %v271_v3, 16 }
  0x9c   : > { %v4269_v45 = vcombine.low %v817_v20, %v4255_v7  ;;  %v645_v8 = vld [vmem:[#allocation2 + $0x50] sm:$0x1]  ;;  %v513_v14 = vshll.u32 %v272_v18, 16  ;;  %vm2558_vm13 = vcmask 97280   ;;  %vm2591_vm14 = vcmask 130048  }
  0x9d   : > { %v2179_v17 = vshll.u32 %v3222_v11, 16  ;;  %v2177_v62 = vshrl.u32 %v3222_v11, 16  ;;  %vm2624_vm15 = vcmask 162816   ;;  %vm2657_vm1 = vcmask 195584  }
  0x9e   : > { %5180 = vst [vmem:[#allocation8_spill] sm:$0xff] %v4269_v45  ;;  %vm2690_vm3 = vcmask 228352   ;;  %vm2723_vm4 = vcmask 261120   ;;  %vm2783_vm5 = vcmask 293888  }
  0x9f   : > { %1952 = vrot.lane.b32.xlu0 %v1908_v38, %s3651_s8  ;;  %1840 = vrot.lane.b32.xlu1 %v1759_v60, %s3650_s7  ;;  %v2181_v5 = vrot.slane %v2179_v17, 1  ;;  %v1164_v38 = vshrl.u32 %v4237_v48, 16  ;;  %v973_v60 = vld [vmem:[#allocation2 + $0x3c] sm:$0xe]  ;;  %v376_v17 = vrot.slane %v374_v36, 7 }
  0xa0   : > { %v4264_v42 = vld [vmem:[#allocation2 + $0xa4] ss:$0 sps:$4 sm:$0x11]   ;;  %v3254_v49 = vcombine.low %v973_v60, %v4200_v25  ;;  %v4281_v25 = vcombine.low %v803_v30, %v4266_v44  ;;  %v4292_v60 = vld [vmem:[#allocation2 + $0x98] ss:$0 sps:$4 sm:$0x11]  }
  0xa1   : > { %v2182_v31 = vor.u32 %v2181_v5, %v2177_v62  ;;  %v4278_v62 = vrot.slane %v3261_v34, 1  ;;  %v379_v5 = vor.u32 %v377_v51, %v376_v17  ;;  %v1169_v20 = vor.u32 %v1168_v40, %v1164_v38  ;;  %v4300_v30 = vld [vmem:[#allocation2 + $0x44] ss:$0 sps:$4 sm:$0x11]   ;;  %v715_v48 = vld [vmem:[#allocation2 + $0xc8] sm:$0x1] }
  0xa2   : > { %5181 = vst [vmem:[#allocation9_spill] sm:$0xff] %v4281_v25  ;;  %v1183_v18 = vshll.u32 %v4300_v30, 16 }
  0xa3   : > { %1954 = vrot.lane.b32.xlu0 %v1911_v35, %s3651_s8  ;;  %1842 = vrot.lane.b32.xlu1 %v1771_v39, %s3650_s7  ;;  %v4262_v35 = vsel %vm1387_vm2, %v2418_v13, %v2419_v33  ;;  %v2266_v39 = vor.u32 %v2265_v2, %v2261_v37  ;;  %v2280_v33 = vshll.u32 %v4264_v42, 16  ;;  %v381_v37 = vrot.slane %v376_v17, 4 }
  0xa5   : > { %v2282_v17 = vrot.slane %v2280_v33, 1 }
  0xa7   : > { %2064 = vrot.lane.b32.xlu0 %v4179_v47, %s3652_s9  ;;  %1968 = vrot.lane.b32.xlu1 %v1932_v63, %s3651_s8  ;;  %v4251_v47 = vcombine.low %v944_v61, %v4234_v59  ;;  %v2187_v61 = vsel %vm1114_vm6, %v2182_v31, %v2186_v41  ;;  %v2421_v31 = vrot.slane %v3254_v49, 1  ;;  %v2422_v41 = vrot.slane %v4221_v57, 1 }
  0xa8   : > { %v4245_v32 = vpop.permute.xlu0 %1436  ;;  %v512_v49 = vrot.slane %v510_v26, 7 }
  0xa9   : > { %v2275_v50 = vshll.u32 %v4251_v47, 16  ;;  %v2273_v13 = vshrl.u32 %v4251_v47, 16 }
  0xab   : > { %2066 = vrot.lane.b32.xlu0 %v3222_v11, %s3652_s9  ;;  %1970 = vrot.lane.b32.xlu1 %v1935_v15, %s3651_s8  ;;  %v368_v11 = vrot.slane %v366_v0, 7  ;;  %v2277_v2 = vrot.slane %v2275_v50, 1  ;;  %v502_v15 = vshrl.u32 %v271_v3, 16  ;;  %v697_v0 = vld [vmem:[#allocation2 + $0xa8] sm:$0xf]  ;;  %v1178_v50 = vshll.u32 %v4281_v25, 16 }
  0xac   : > { %v4273_v9 = vpop.permute.xlu0 %1307  ;;  %v819_v3 = vld [vmem:[#allocation2 + $0x9c] sm:$0xf] }
  0xad   : > { %v371_v58 = vor.u32 %v369_v52, %v368_v11  ;;  %v372_v63 = vrot.slane %v368_v11, 4  ;;  %v2271_v52 = vsel %vm1114_vm6, %v2266_v39, %v2270_v43  ;;  %v504_v38 = vrot.slane %v502_v15, 7  ;;  %v257_v43 = vld [vmem:[%s3791_s30 + $0x30] sm:$0xf]  ;;  %v981_v15 = vld [vmem:[#allocation2 + $0x9c] sm:$0xe] }
  0xae   : > { %v2443_v11 = vrot.slane %v4228_v46, 1  ;;  %v1262_v39 = vshll.u32 %v4269_v45, 16  ;;  %v2278_v57 = vor.u32 %v2277_v2, %v2273_v13  ;;  %v515_v46 = vor.u32 %v513_v14, %v512_v49  ;;  %v845_v13 = vld [vmem:[#allocation2 + $0x30] sm:$0xe] }
  0xaf   : > { %2336 = vrot.lane.b32.xlu0 %v2175_v4, %s3653_s21  ;;  %2080 = vrot.lane.b32.xlu1 %v4214_v23, %s3652_s9  ;;  %v642_v4 = vsel %vm3804_vm7, %v371_v58, %v641_v56  ;;  %v380_v34 = vsel %vm3812_vm8, %v372_v63, %v379_v5  ;;  %v646_v23 = vsel %vm3843_vm9, %v381_v37, %v645_v8  ;;  %v508_v40 = vrot.slane %v504_v38, 4  ;;  %v701_v58 = vld [vmem:[#allocation2 + $0xb0] sm:$0x1] }
  0xb0   : > { %643 = vst [vmem:[#allocation2 + $0x48] sm:$0xf] %v642_v4  ;;  %644 = vst.msk [vmem:[#allocation2 + $0x4c] sm:$0xf] %vm186_vm0, %v380_v34  ;;  %v507_v56 = vor.u32 %v505_v19, %v504_v38  ;;  %v1174_v63 = vsel %vm1114_vm6, %v1169_v20, %v1173_v29  ;;  %v517_v5 = vrot.slane %v512_v49, 4  ;;  %v1176_v8 = vshrl.u32 %v4281_v25, 16 }
  0xb1   : > { %647 = vst [vmem:[#allocation2 + $0x50] sm:$0x1] %v646_v23  ;;  %v4304_v36 = vpop.permute.xlu1 %1564  ;;  %v383_v29 = vshrl.u32 %v257_v43, 16  ;;  %v1180_v4 = vrot.slane %v1178_v50, 1  ;;  %v1267_v37 = vshll.u32 %v4292_v60, 16  ;;  %v516_v2 = vsel %vm3812_vm8, %v508_v40, %v515_v46 }
  0xb2   : > { %v698_v33 = vsel %vm3804_vm7, %v507_v56, %v697_v0  ;;  %v258_v34 = vld [vmem:[%s3791_s30 + $0x34] sm:$0xf]  ;;  %v2283_v19 = vsel %vm1114_vm6, %v2278_v57, %v2282_v17  ;;  %v1264_v23 = vrot.slane %v1262_v39, 1  ;;  %700 = vst.msk [vmem:[#allocation2 + $0xac] sm:$0xf] %vm186_vm0, %v516_v2  ;;  %v386_v14 = vshll.u32 %v257_v43, 16 }
  0xb3   : > { %2338 = vrot.lane.b32.xlu0 %v2187_v61, %s3653_s21  ;;  %2082 = vrot.lane.b32.xlu1 %v4251_v47, %s3652_s9  ;;  %v1260_v47 = vshrl.u32 %v4269_v45, 16  ;;  %v4314_v61 = vld [vmem:[#allocation2 + $0xa0] sm:$0xf]  ;;  %699 = vst [vmem:[#allocation2 + $0xa8] sm:$0xf] %v698_v33  ;;  %v2423_v49 = vsel %vm1387_vm2, %v2421_v31, %v2422_v41  ;;  %v1185_v57 = vrot.slane %v1183_v18, 1  ;;  %v3262_v56 = vcombine.low %v981_v15, %v4234_v59 }
  0xb4   : > { %v4333_v26 = vcombine.low %v819_v3, %v4314_v61  ;;  %v846_v38 = vld [vmem:[#allocation2 + $0x3c] sm:$0xe]  ;;  %v4339_v50 = vld [vmem:[#allocation2 + $0xa4] ss:$0 sps:$4 sm:$0x11]   ;;  %v385_v39 = vrot.slane %v383_v29, 7  ;;  %v2444_v43 = vsel %vm1387_vm2, %v4278_v62, %v2443_v11  ;;  %v1181_v40 = vor.u32 %v1180_v4, %v1176_v8 }
  0xb5   : > { %v4306_v51 = vpop.permute.xlu0 %1548  ;;  %v391_v17 = vshrl.u32 %v258_v34, 16  ;;  %v3524_v3 = vld [vmem:[%s5162_s1 + $0x10] ss:$0 sps:$4 sm:$0x33]   ;;  %v1269_v46 = vrot.slane %v1267_v37, 1  ;;  %v1401_v59 = vrot.slane %v4230_v1, 1  ;;  %v3160_v11 = vcombine.low %v846_v38, %v4266_v44 }
  0xb6   : > { %5182 = vst [vmem:[#allocation10_spill] sm:$0xff] %v4333_v26  ;;  %v1274_v31 = vshll.u32 %v4333_v26, 16  ;;  %v388_v41 = vor.u32 %v386_v14, %v385_v39  ;;  %v389_v18 = vrot.slane %v385_v39, 4  ;;  %v1279_v8 = vshll.u32 %v4339_v50, 16  ;;  %v865_v33 = vld [vmem:[#allocation2 + $0x3c] sm:$0xf]  ;;  %3357 = vmatprep.subr.msk.bf16.mxu0 %vm2816_vm10, %v3524_v3  ;;  %3358 = vmatprep.subr.msk.bf16.mxu1 %vm2816_vm10, %v3524_v3 }
  0xb7   : > { %2464 = vrot.lane.b32.xlu0 %v4262_v35, %s3654_s23  ;;  %2352 = vrot.lane.b32.xlu1 %v2271_v52, %s3653_s21  ;;  %v702_v35 = vsel %vm3843_vm9, %v517_v5, %v701_v58  ;;  %v4336_v0 = vpop.permute.xlu1 %1566  ;;  %v3159_v52 = vcombine.low %v845_v13, %v4218_v54  ;;  %v394_v58 = vshll.u32 %v258_v34, 16  ;;  %v648_v54 = vld [vmem:[#allocation2 + $0x54] sm:$0xf]  ;;  %v393_v13 = vrot.slane %v391_v17, 7  ;;  %v4364_v2 = vld [vmem:[#allocation2 + $0x40] sm:$0xf] }
  0xb8   : > { %703 = vst [vmem:[#allocation2 + $0xb0] sm:$0x1] %v702_v35  ;;  %v1186_v1 = vsel %vm1114_vm6, %v1181_v40, %v1185_v57  ;;  %v2445_v4 = vrot.slane %v3262_v56, 1  ;;  %v2446_v37 = vrot.slane %v4264_v42, 1  ;;  %v1272_v34 = vshrl.u32 %v4333_v26, 16 }
  0xb9   : > { %v1400_v5 = vrot.slane %v3159_v52, 1  ;;  %v396_v44 = vor.u32 %v394_v58, %v393_v13  ;;  %v1276_v15 = vrot.slane %v1274_v31, 1  ;;  %v273_v52 = vld [vmem:[%s3791_s30 + $0x70] sm:$0xf]  ;;  %v1403_v42 = vrot.slane %v3160_v11, 1 }
  0xba   : > { %v4330_v20 = vpop.permute.xlu0 %1550  ;;  %v1404_v38 = vrot.slane %v4300_v30, 1  ;;  %v4374_v57 = vcombine.low %v865_v33, %v4364_v2  ;;  %v2447_v56 = vsel %vm1387_vm2, %v2445_v4, %v2446_v37  ;;  %v274_v40 = vld [vmem:[%s3791_s30 + $0x74] sm:$0xf]  ;;  %v519_v31 = vshrl.u32 %v273_v52, 16  ;;  %v4393_v33 = vld [vmem:[#allocation2 + $0xa0] sm:$0xf] }
  0xbb   : > { %1315 = vrot.lane.b32.xlu0 %v1174_v63, %s3648_s5  ;;  %2354 = vrot.lane.b32.xlu1 %v2283_v19, %s3653_s21  ;;  %v1265_v63 = vor.u32 %v1264_v23, %v1260_v47  ;;  %v649_v47 = vsel %vm3804_vm7, %v388_v41, %v648_v54  ;;  %v2818_v19 = vsel %vm2816_vm10, %v3524_v3, 0  ;;  %v853_v23 = vld [vmem:[#allocation2 + $0x90] sm:$0xe]  ;;  %v397_v14 = vsel %vm3812_vm8, %v389_v18, %v396_v44  ;;  %v867_v3 = vld [vmem:[#allocation2 + $0x48] sm:$0xf] }
  0xbc   : > { %650 = vst [vmem:[#allocation2 + $0x54] sm:$0xf] %v649_v47  ;;  %3318 = vmatpush3.bf16.msra.mxu0 %v2818_v19  ;;  %3356 = vmatpush3.bf16.msra.mxu1 %v2818_v19  ;;  %651 = vst.msk [vmem:[#allocation2 + $0x58] sm:$0xf] %vm186_vm0, %v397_v14  ;;  %v1402_v17 = vsel %vm1387_vm2, %v1400_v5, %v1401_v59  ;;  %v1277_v54 = vor.u32 %v1276_v15, %v1272_v34  ;;  %v854_v41 = vld [vmem:[#allocation2 + $0x9c] sm:$0xe] }
  0xbd   : > { %v1270_v35 = vsel %vm1114_vm6, %v1265_v63, %v1269_v46  ;;  %v3167_v30 = vcombine.low %v853_v23, %v4255_v7  ;;  %v4386_v63 = vld [vmem:[#allocation2 + $0x4c] sm:$0xf]  ;;  %v398_v46 = vrot.slane %v393_v13, 4  ;;  %v4388_v18 = vld [vmem:[#allocation2 + $0x44] ss:$0 sps:$4 sm:$0x11]   ;;  %v1405_v5 = vsel %vm1387_vm2, %v1403_v42, %v1404_v38 }
  0xbe   : > { %v4353_v62 = vpop.permute.xlu0 %1438  ;;  %v522_v11 = vshll.u32 %v273_v52, 16  ;;  %v1679_v59 = vshll.u32 %v4374_v57, 16  ;;  %v521_v47 = vrot.slane %v519_v31, 7  ;;  %v3176_v4 = vcombine.low %v867_v3, %v4386_v63  ;;  %v909_v3 = vld [vmem:[#allocation2 + $0x3c] sm:$0xe] }
  0xbf   : > { %2466 = vrot.lane.b32.xlu0 %v2423_v49, %s3654_s23  ;;  %2480 = vrot.lane.b32.xlu1 %v2444_v43, %s3654_s23  ;;  %v1281_v49 = vrot.slane %v1279_v8, 1  ;;  %v652_v43 = vld [vmem:[#allocation2 + $0x5c] sm:$0x1]  ;;  %v527_v37 = vshrl.u32 %v274_v40, 16  ;;  %v530_v44 = vshll.u32 %v274_v40, 16  ;;  %v1424_v19 = vrot.slane %v3167_v30, 1 }
  0xc0   : > { %v881_v8 = vld [vmem:[#allocation2 + $0x9c] sm:$0xf]  ;;  %v653_v7 = vsel %vm3843_vm9, %v398_v46, %v652_v43  ;;  %v3168_v23 = vcombine.low %v854_v41, %v4314_v61  ;;  %v524_v14 = vor.u32 %v522_v11, %v521_v47  ;;  %v1684_v52 = vshll.u32 %v4388_v18, 16  ;;  %v4417_v40 = vld [vmem:[#allocation2 + $0x50] ss:$0 sps:$4 sm:$0x11]  }
  0xc1   : > { %v4360_v29 = vpop.permute.xlu1 %1452  ;;  %654 = vst [vmem:[#allocation2 + $0x5c] sm:$0x1] %v653_v7  ;;  %v1282_v15 = vsel %vm1114_vm6, %v1277_v54, %v1281_v49  ;;  %v4408_v42 = vcombine.low %v881_v8, %v4393_v33  ;;  %v529_v38 = vrot.slane %v527_v37, 7  ;;  %v1691_v61 = vshll.u32 %v3176_v4, 16  ;;  %v4424_v8 = vld [vmem:[#allocation2 + $0xac] sm:$0xf] }
  0xc2   : > { %v1427_v31 = vrot.slane %v3168_v23, 1  ;;  %v1428_v41 = vrot.slane %v4339_v50, 1  ;;  %v1686_v11 = vrot.slane %v1684_v52, 1  ;;  %v4426_v7 = vld [vmem:[#allocation2 + $0xa4] ss:$0 sps:$4 sm:$0x11]  }
  0xc3   : > { %1317 = vrot.lane.b32.xlu0 %v1186_v1, %s3648_s5  ;;  %1331 = vrot.lane.b32.xlu1 %v1270_v35, %s3648_s5  ;;  %v1425_v1 = vrot.slane %v4292_v60, 1  ;;  %v704_v35 = vld [vmem:[#allocation2 + $0xb4] sm:$0xf]  ;;  %v525_v60 = vrot.slane %v521_v47, 4  ;;  %v532_v54 = vor.u32 %v530_v44, %v529_v38  ;;  %v708_v37 = vld [vmem:[#allocation2 + $0xbc] sm:$0x1] }
  0xc4   : > { %v705_v43 = vsel %vm3804_vm7, %v524_v14, %v704_v35  ;;  %v4432_v35 = vld [vmem:[#allocation2 + $0x4c] sm:$0xf]  ;;  %v1696_v23 = vshll.u32 %v4417_v40, 16  ;;  %v910_v52 = vld [vmem:[#allocation2 + $0x48] sm:$0xe] }
  0xc5   : > { %v4378_v39 = vpop.permute.xlu1 %1454  ;;  %v4383_v58 = vpop.permute.xlu0 %1323  ;;  %706 = vst [vmem:[#allocation2 + $0xb4] sm:$0xf] %v705_v43  ;;  %v1426_v46 = vsel %vm1387_vm2, %v1424_v19, %v1425_v1  ;;  %v533_v47 = vsel %vm3812_vm8, %v525_v60, %v532_v54  ;;  %v930_v1 = vld [vmem:[#allocation2 + $0x48] sm:$0xf]  ;;  %v1693_v19 = vrot.slane %v1691_v61, 1  ;;  %v1429_v60 = vsel %vm1387_vm2, %v1427_v31, %v1428_v41 }
  0xc6   : > { %707 = vst.msk [vmem:[#allocation2 + $0xb8] sm:$0xf] %vm186_vm0, %v533_v47  ;;  %v4445_v43 = vcombine.low %v930_v1, %v4432_v35  ;;  %v1773_v54 = vshrl.u32 %v4408_v42, 16  ;;  %v3208_v31 = vcombine.low %v910_v52, %v4386_v63  ;;  %v1698_v41 = vrot.slane %v1696_v23, 1 }
  0xc7   : > { %1444 = vrot.lane.b32.xlu0 %v1402_v17, %s3647_s4  ;;  %2482 = vrot.lane.b32.xlu1 %v2447_v56, %s3654_s23  ;;  %v1677_v17 = vshrl.u32 %v4374_v57, 16  ;;  %v1681_v56 = vrot.slane %v1679_v59, 1  ;;  %v883_v59 = vld [vmem:[#allocation2 + $0xa8] sm:$0xf]  ;;  %v2494_v63 = vsel %vm2492_vm11, %v3796_v10, %v4273_v9  ;;  %v2510_v25 = vsel %vm2492_vm11, %v3903_v24, %v4383_v58 }
  0xc8   : > { %v918_v10 = vld [vmem:[#allocation2 + $0xa8] sm:$0xe] }
  0xc9   : > { %v4398_v13 = vpop.permute.xlu1 %1309  ;;  %v4402_v34 = vpop.permute.xlu0 %1820  ;;  %v1682_v44 = vor.u32 %v1681_v56, %v1677_v17  ;;  %v534_v17 = vrot.slane %v529_v38, 4  ;;  %v3207_v56 = vcombine.low %v909_v3, %v4364_v2  ;;  %v1780_v2 = vshll.u32 %v4426_v7, 16 }
  0xca   : > { %v2496_v24 = vsel %vm2492_vm11, %v3881_v55, %v4398_v13 }
  0xcb   : > { %1446 = vrot.lane.b32.xlu0 %v1405_v5, %s3647_s4  ;;  %1333 = vrot.lane.b32.xlu1 %v1282_v15, %s3648_s5  ;;  %v1775_v5 = vshll.u32 %v4408_v42, 16  ;;  %v1689_v15 = vshrl.u32 %v3176_v4, 16  ;;  %v1687_v61 = vsel %vm1114_vm6, %v1682_v44, %v1686_v11  ;;  %v709_v47 = vsel %vm3843_vm9, %v534_v17, %v708_v37  ;;  %v4462_v37 = vld [vmem:[#allocation2 + $0x50] ss:$0 sps:$4 sm:$0x11]  }
  0xcc   : > { %710 = vst [vmem:[#allocation2 + $0xbc] sm:$0x1] %v709_v47  ;;  %v917_v44 = vld [vmem:[#allocation2 + $0x9c] sm:$0xe]  ;;  %v1912_v1 = vrot.slane %v3207_v56, 1  ;;  %v1782_v52 = vrot.slane %v1780_v2, 1  ;;  %v2527_v2 = vsel %vm2525_vm12, %v2494_v63, %v4245_v32 }
  0xcd   : > { %v4415_v49 = vpop.permute.xlu1 %1325  ;;  %v4419_v30 = vpop.permute.xlu0 %1822  ;;  %v1694_v38 = vor.u32 %v1693_v19, %v1689_v15  ;;  %v1913_v15 = vrot.slane %v4388_v18, 1  ;;  %v1916_v17 = vrot.slane %v4417_v40, 1  ;;  %v2189_v18 = vshrl.u32 %v4445_v43, 16  ;;  %v932_v40 = vld [vmem:[#allocation2 + $0x54] sm:$0xf] }
  0xcf   : > { %1556 = vrot.lane.b32.xlu0 %v4374_v57, %s3649_s6  ;;  %1460 = vrot.lane.b32.xlu1 %v1426_v46, %s3647_s4  ;;  %v3184_v57 = vcombine.low %v883_v59, %v4424_v8  ;;  %v1777_v46 = vrot.slane %v1775_v5, 1  ;;  %v4457_v59 = vld [vmem:[#allocation2 + $0xb0] ss:$0 sps:$4 sm:$0x11]   ;;  %v2191_v5 = vshll.u32 %v4445_v43, 16  ;;  %v1699_v23 = vsel %vm1114_vm6, %v1694_v38, %v1698_v41 }
  0xd0   : > { %v1792_v56 = vshll.u32 %v4457_v59, 16  ;;  %v2196_v38 = vshll.u32 %v4462_v37, 16  ;;  %v4482_v41 = vld [vmem:[#allocation2 + $0xac] sm:$0xf] }
  0xd1   : > { %v4436_v50 = vpop.permute.xlu1 %1836  ;;  %v4439_v14 = vpop.permute.xlu0 %1948  ;;  %v1778_v19 = vor.u32 %v1777_v46, %v1773_v54  ;;  %v1785_v9 = vshrl.u32 %v3184_v57, 16  ;;  %v3215_v54 = vcombine.low %v917_v44, %v4393_v33  ;;  %v1914_v33 = vsel %vm1387_vm2, %v1912_v1, %v1913_v15  ;;  %v4489_v44 = vld [vmem:[#allocation2 + $0x58] sm:$0xf] }
  0xd2   : > { %v1794_v45 = vrot.slane %v1792_v56, 1  ;;  %v1937_v15 = vrot.slane %v4426_v7, 1  ;;  %v805_v56 = vld [vmem:[#allocation2 + $0x48] sm:$0xf] }
  0xd3   : > { %1558 = vrot.lane.b32.xlu0 %v3176_v4, %s3649_s6  ;;  %1462 = vrot.lane.b32.xlu1 %v1429_v60, %s3647_s4  ;;  %v1787_v4 = vshll.u32 %v3184_v57, 16  ;;  %v1915_v60 = vrot.slane %v3208_v31, 1  ;;  %v946_v31 = vld [vmem:[#allocation2 + $0xa8] sm:$0xf]  ;;  %v1783_v26 = vsel %vm1114_vm6, %v1778_v19, %v1782_v52  ;;  %v4506_v19 = vcombine.low %v932_v40, %v4489_v44 }
  0xd4   : > { %v4500_v63 = vcombine.low %v946_v31, %v4482_v41  ;;  %v276_v31 = vld [vmem:[%s3791_s30 + $0x7c] sm:$0xf] }
  0xd5   : > { %v4455_v3 = vpop.permute.xlu0 %1950  ;;  %v4459_v11 = vpop.permute.xlu1 %1838  ;;  %v1917_v1 = vsel %vm1387_vm2, %v1915_v60, %v1916_v17  ;;  %v2203_v13 = vshll.u32 %v4506_v19, 16  ;;  %v4602_v53 = vld [vmem:[#allocation2 + $0xbc] ss:$0 sps:$4 sm:$0x11]  }
  0xd6   : > { %v2287_v55 = vshll.u32 %v4500_v63, 16 }
  0xd7   : > { %1828 = vrot.lane.b32.xlu0 %v1687_v61, %s3650_s7  ;;  %1572 = vrot.lane.b32.xlu1 %v4408_v42, %s3649_s6  ;;  %v1789_v61 = vrot.slane %v1787_v4, 1  ;;  %v2193_v42 = vrot.slane %v2191_v5, 1  ;;  %v3216_v4 = vcombine.low %v918_v10, %v4424_v8  ;;  %v974_v8 = vld [vmem:[#allocation2 + $0x48] sm:$0xe]  ;;  %v1940_v10 = vrot.slane %v4457_v59, 1 }
  0xd8   : > { %v3255_v17 = vcombine.low %v974_v8, %v4432_v35  ;;  %v4531_v35 = vld [vmem:[#allocation2 + $0x5c] ss:$0 sps:$4 sm:$0x11]  }
  0xd9   : > { %v4473_v47 = vpop.permute.xlu0 %2060  ;;  %v4478_v46 = vpop.permute.xlu1 %1964  ;;  %v2194_v52 = vor.u32 %v2193_v42, %v2189_v18  ;;  %v1939_v58 = vrot.slane %v3216_v4, 1  ;;  %v4517_v18 = vld [vmem:[#allocation2 + $0x4c] sm:$0xf] }
  0xda   : > { %v4543_v42 = vcombine.low %v805_v56, %v4517_v18  ;;  %v4551_v4 = vrot.slane %v3255_v17, 1  ;;  %v544_v56 = vshrl.u32 %v276_v31, 16 }
  0xdb   : > { %1830 = vrot.lane.b32.xlu0 %v1699_v23, %s3650_s7  ;;  %1574 = vrot.lane.b32.xlu1 %v3184_v57, %s3649_s6  ;;  %v1790_v23 = vor.u32 %v1789_v61, %v1785_v9  ;;  %v1936_v57 = vrot.slane %v3215_v54, 1  ;;  %v2198_v9 = vrot.slane %v2196_v38, 1  ;;  %v2543_v61 = vsel %vm2525_vm12, %v2510_v25, %v4360_v29  ;;  %v4528_v29 = vld [vmem:[#allocation2 + $0x54] sm:$0xe]  ;;  %v275_v38 = vld [vmem:[%s3791_s30 + $0x78] sm:$0xf] }
  0xdc   : > { %v2560_v25 = vsel %vm2558_vm13, %v2527_v2, %v4306_v51  ;;  %v4535_v59 = vsel %vm2558_vm13, %v2543_v61, %v4304_v36  ;;  %v1941_v51 = vsel %vm1387_vm2, %v1939_v58, %v1940_v10  ;;  %v2205_v10 = vrot.slane %v2203_v13, 1  ;;  %v821_v36 = vld [vmem:[#allocation2 + $0xa8] sm:$0xf] }
  0xdd   : > { %v4491_v5 = vpop.permute.xlu0 %2062  ;;  %v4497_v32 = vpop.permute.xlu1 %1966  ;;  %v1795_v7 = vsel %vm1114_vm6, %v1790_v23, %v1794_v45  ;;  %v2529_v45 = vsel %vm2525_vm12, %v2496_v24, %v4353_v62  ;;  %v4540_v62 = vsel %vm1114_vm6, %v2194_v52, %v2198_v9  ;;  %v2593_v40 = vsel %vm2591_vm14, %v2560_v25, %v4402_v34  ;;  %v4564_v52 = vld [vmem:[#allocation2 + $0xb8] sm:$0xf]  ;;  %v711_v25 = vld [vmem:[#allocation2 + $0xc0] sm:$0xf] }
  0xde   : > { %v2285_v23 = vshrl.u32 %v4500_v63, 16  ;;  %v2562_v8 = vsel %vm2558_vm13, %v2529_v45, %v4330_v20  ;;  %v2201_v34 = vshrl.u32 %v4506_v19, 16  ;;  %v2289_v24 = vrot.slane %v2287_v55, 1 }
  0xdf   : > { %1956 = vrot.lane.b32.xlu0 %v1914_v33, %s3651_s8  ;;  %1844 = vrot.lane.b32.xlu1 %v1783_v26, %s3650_s7  ;;  %v1938_v26 = vsel %vm1387_vm2, %v1936_v57, %v1937_v15  ;;  %v4554_v33 = vld [vmem:[#allocation2 + $0xb0] ss:$0 sps:$4 sm:$0x11]   ;;  %v948_v15 = vld [vmem:[#allocation2 + $0xb4] sm:$0xf]  ;;  %v2626_v58 = vsel %vm2624_vm15, %v2593_v40, %v4439_v14  ;;  %v2208_v20 = vshll.u32 %v4531_v35, 16  ;;  %v2512_v14 = vsel %vm2492_vm11, %v3898_v6, %v4415_v49 }
  0xe0   : > { %v536_v9 = vshrl.u32 %v275_v38, 16  ;;  %v2659_v61 = vsel %vm2657_vm1, %v2626_v58, %v4473_v47  ;;  %v539_v17 = vshll.u32 %v275_v38, 16  ;;  %v547_v55 = vshll.u32 %v276_v31, 16  ;;  %v807_v40 = vld [vmem:[#allocation2 + $0x54] sm:$0xf] }
  0xe1   : > { %v2333_v60 = vpop.permute.xlu0 %2332  ;;  %v4519_v54 = vpop.permute.xlu1 %2076  ;;  %v4581_v13 = vcombine.low %v948_v15, %v4564_v52  ;;  %v4583_v47 = vld [vmem:[#allocation2 + $0x58] sm:$0xf]  ;;  %v2595_v38 = vsel %vm2591_vm14, %v2562_v8, %v4419_v30  ;;  %v4589_v6 = vld [vmem:[#allocation2 + $0xac] sm:$0xf]  ;;  %v546_v49 = vrot.slane %v544_v56, 7  ;;  %v1190_v15 = vshll.u32 %v4543_v42, 16 }
  0xe2   : > { %v2206_v30 = vor.u32 %v2205_v10, %v2201_v34  ;;  %v2210_v8 = vrot.slane %v2208_v20, 1  ;;  %v1188_v20 = vshrl.u32 %v4543_v42, 16  ;;  %v2628_v22 = vsel %vm2624_vm15, %v2595_v38, %v4455_v3 }
  0xe3   : > { %1958 = vrot.lane.b32.xlu0 %v1917_v1, %s3651_s8  ;;  %1846 = vrot.lane.b32.xlu1 %v1795_v7, %s3650_s7  ;;  %v4574_v7 = vld [vmem:[#allocation2 + $0x50] ss:$0 sps:$4 sm:$0x11]   ;;  %v2292_v1 = vshll.u32 %v4554_v33, 16  ;;  %v2297_v3 = vshrl.u32 %v4581_v13, 16 }
  0xe5   : > { %v4549_v2 = vpop.permute.xlu0 %2334  ;;  %v4559_v57 = vpop.permute.xlu1 %2078  ;;  %v2294_v10 = vrot.slane %v2292_v1, 1  ;;  %v1192_v1 = vrot.slane %v1190_v15, 1 }
  0xe7   : > { %2068 = vrot.lane.b32.xlu0 %v4445_v43, %s3652_s9  ;;  %1972 = vrot.lane.b32.xlu1 %v1938_v26, %s3651_s8  ;;  %v2692_v43 = vsel %vm2690_vm3, %v2659_v61, %v2333_v60  ;;  %v538_v26 = vrot.slane %v536_v9, 7  ;;  %v2290_v60 = vor.u32 %v2289_v24, %v2285_v23  ;;  %v4605_v23 = vcombine.low %v821_v36, %v4589_v6 }
  0xe8   : > { %v2609_v36 = vsel %vm2591_vm14, %v4535_v59, %v4436_v50  ;;  %v2211_v50 = vsel %vm1114_vm6, %v2206_v30, %v2210_v8  ;;  %v4660_v8 = vld [vmem:[#allocation2 + $0xb0] ss:$0 sps:$4 sm:$0x11]  }
  0xe9   : > { %v2461_v45 = vpop.permute.xlu0 %2460  ;;  %v2349_v58 = vpop.permute.xlu1 %2348  ;;  %v541_v9 = vor.u32 %v539_v17, %v538_v26  ;;  %v542_v61 = vrot.slane %v538_v26, 4  ;;  %v1195_v17 = vshll.u32 %v4574_v7, 16  ;;  %v2642_v27 = vsel %vm2624_vm15, %v2609_v36, %v4478_v46 }
  0xea   : > { %v2725_v31 = vsel %vm2723_vm4, %v2692_v43, %v2461_v45  ;;  %v4597_v43 = vcombine.low %v807_v40, %v4583_v47  ;;  %v549_v45 = vor.u32 %v547_v55, %v546_v49  ;;  %v2661_v26 = vsel %vm2657_vm1, %v2628_v22, %v4491_v5 }
  0xeb   : > { %2070 = vrot.lane.b32.xlu0 %v4506_v19, %s3652_s9  ;;  %3319 = vmatprep.mubr.msk.bf16.mxu0 %vm2783_vm5, %v2725_v31  ;;  %v2299_v19 = vshll.u32 %v4581_v13, 16  ;;  %v712_v24 = vsel %vm3804_vm7, %v541_v9, %v711_v25  ;;  %v982_v25 = vld [vmem:[#allocation2 + $0xa8] sm:$0xe]  ;;  %v2675_v59 = vsel %vm2657_vm1, %v2642_v27, %v4519_v54  ;;  %v2694_v12 = vsel %vm2690_vm3, %v2661_v26, %v4549_v2  ;;  %v4646_v9 = vld [vmem:[#allocation2 + $0x5c] ss:$0 sps:$4 sm:$0x11]  }
  0xec   : > { %1974 = vrot.lane.b32.xlu1 %v1941_v51, %s3651_s8  ;;  %v551_v51 = vrot.slane %v546_v49, 4  ;;  %v550_v55 = vsel %vm3812_vm8, %v542_v61, %v549_v45  ;;  %713 = vst [vmem:[#allocation2 + $0xc0] sm:$0xf] %v712_v24  ;;  %v2304_v46 = vshll.u32 %v4602_v53, 16  ;;  %v2708_v5 = vsel %vm2690_vm3, %v2675_v59, %v2349_v58 }
  0xed   : > { %v4599_v56 = vpop.permute.xlu0 %1311  ;;  %v4609_v34 = vpop.permute.xlu1 %2350  ;;  %714 = vst.msk [vmem:[#allocation2 + $0xc4] sm:$0xf] %vm186_vm0, %v550_v55  ;;  %v3263_v38 = vcombine.low %v982_v25, %v4482_v41  ;;  %v2545_v49 = vsel %vm2525_vm12, %v2512_v14, %v4378_v39  ;;  %v1193_v2 = vor.u32 %v1192_v1, %v1188_v20  ;;  %v1197_v15 = vrot.slane %v1195_v17, 1  ;;  %v983_v1 = vld [vmem:[#allocation2 + $0xb4] sm:$0xe] }
  0xee   : > { %v716_v40 = vsel %vm3843_vm9, %v551_v51, %v715_v48  ;;  %v5183_v41 = vrot.slane %v4462_v37, 1  ;;  %v2295_v14 = vsel %vm1114_vm6, %v2290_v60, %v2294_v10  ;;  %v5184_v58 = vcombine.low %v4528_v29, %v4489_v44  ;;  %v823_v29 = vld [vmem:[#allocation2 + $0xb4] sm:$0xf]  ;;  %v4671_v10 = vld [vmem:[#allocation2 + $0xb8] sm:$0xf] }
  0xef   : > { %2340 = vrot.lane.b32.xlu0 %v4540_v62, %s3653_s21  ;;  %717 = vst [vmem:[#allocation2 + $0xc8] sm:$0x1] %v716_v40  ;;  %v2301_v62 = vrot.slane %v2299_v19, 1  ;;  %v1202_v30 = vshll.u32 %v4597_v43, 16  ;;  %v2306_v19 = vrot.slane %v2304_v46, 1  ;;  %v2428_v24 = vrot.slane %v4531_v35, 1 }
  0xf0   : > { %2084 = vrot.lane.b32.xlu1 %v4500_v63, %s3652_s9  ;;  %v2426_v39 = vsel %vm1387_vm2, %v4551_v4, %v5183_v41  ;;  %v2427_v61 = vrot.slane %v5184_v58, 1  ;;  %v1286_v37 = vshll.u32 %v4605_v23, 16  ;;  %v2578_v4 = vsel %vm2558_vm13, %v2545_v49, %v4336_v0  ;;  %v847_v0 = vld [vmem:[#allocation2 + $0x48] sm:$0xe]  ;;  %v869_v58 = vld [vmem:[#allocation2 + $0x54] sm:$0xf] }
  0xf1   : > { %v2463_v48 = vpop.permute.xlu0 %2462  ;;  %v2477_v31 = vpop.permute.xlu1 %2476  ;;  %v2448_v51 = vrot.slane %v3263_v38, 1  ;;  %v2449_v44 = vrot.slane %v4554_v33, 1  ;;  %v2611_v20 = vsel %vm2591_vm14, %v2578_v4, %v4459_v11  ;;  %v1198_v35 = vsel %vm1114_vm6, %v1193_v2, %v1197_v15  ;;  %v4704_v49 = vld [vmem:[#allocation2 + $0xbc] ss:$0 sps:$4 sm:$0x11]  }
  0xf2   : > { %v2727_v63 = vsel %vm2723_vm4, %v2694_v12, %v2463_v48  ;;  %v2741_v54 = vsel %vm2723_vm4, %v2708_v5, %v2477_v31  ;;  %v1200_v17 = vshrl.u32 %v4597_v43, 16  ;;  %v1207_v55 = vshll.u32 %v4646_v9, 16  ;;  %v848_v5 = vld [vmem:[#allocation2 + $0x54] sm:$0xe]  ;;  %v855_v4 = vld [vmem:[#allocation2 + $0xa8] sm:$0xe] }
  0xf3   : > { %2342 = vrot.lane.b32.xlu0 %v2211_v50, %s3653_s21  ;;  %3320 = vmatmul.mubr.msk.bf16.vlgmr.msra.gmra.mrb[0].mxu0 %vm2783_vm5, %v2727_v63  ;;  %v2644_v36 = vsel %vm2624_vm15, %v2611_v20, %v4497_v32  ;;  %v1204_v33 = vrot.slane %v1202_v30, 1  ;;  %v1284_v22 = vshrl.u32 %v4605_v23, 16  ;;  %v1291_v25 = vshll.u32 %v4660_v8, 16 }
  0xf4   : > { %2086 = vrot.lane.b32.xlu1 %v4581_v13, %s3652_s9  ;;  %3335 = vmatprep.mubr.msk.bf16.mxu1 %vm2783_vm5, %v2741_v54  ;;  %v2302_v13 = vor.u32 %v2301_v62, %v2297_v3  ;;  %v2677_v11 = vsel %vm2657_vm1, %v2644_v36, %v4559_v57  ;;  %v1288_v26 = vrot.slane %v1286_v37, 1  ;;  %v4690_v50 = vcombine.low %v823_v29, %v4671_v10  ;;  %v4733_v36 = vld [vmem:[#allocation2 + $0x64] sm:$0xf] }
  0xf5   : > { %v4662_v45 = vpop.permute.xlu0 %1313  ;;  %v4668_v60 = vpop.permute.xlu1 %1327  ;;  %v2710_v32 = vsel %vm2690_vm3, %v2677_v11, %v4609_v34  ;;  %v3161_v12 = vcombine.low %v847_v0, %v4517_v18  ;;  %v3264_v57 = vcombine.low %v983_v1, %v4564_v52  ;;  %v2429_v48 = vsel %vm1387_vm2, %v2427_v61, %v2428_v24  ;;  %v871_v0 = vld [vmem:[#allocation2 + $0x60] sm:$0xf]  ;;  %v4741_v11 = vld [vmem:[#allocation2 + $0x5c] ss:$0 sps:$4 sm:$0x11]  }
  0xf6   : > { %v2307_v27 = vsel %vm1114_vm6, %v2302_v13, %v2306_v19  ;;  %v1205_v62 = vor.u32 %v1204_v33, %v1200_v17  ;;  %v1209_v46 = vrot.slane %v1207_v55, 1  ;;  %v2450_v34 = vsel %vm1387_vm2, %v2448_v51, %v2449_v44 }
  0xf7   : > { %2468 = vrot.lane.b32.xlu0 %v2426_v39, %s3654_s23  ;;  %v1289_v63 = vor.u32 %v1288_v26, %v1284_v22  ;;  %v1293_v31 = vrot.slane %v1291_v25, 1  ;;  %v1298_v18 = vshll.u32 %v4690_v50, 16  ;;  %v1406_v54 = vrot.slane %v3161_v12, 1  ;;  %v856_v22 = vld [vmem:[#allocation2 + $0xb4] sm:$0xe] }
  0xf8   : > { %2356 = vrot.lane.b32.xlu1 %v2295_v14, %s3653_s21  ;;  %v1407_v2 = vrot.slane %v4574_v7, 1  ;;  %v1210_v15 = vsel %vm1114_vm6, %v1205_v62, %v1209_v46  ;;  %v2451_v41 = vrot.slane %v3264_v57, 1  ;;  %v2452_v39 = vrot.slane %v4602_v53, 1  ;;  %v4720_v7 = vld [vmem:[#allocation2 + $0x58] sm:$0xf] }
  0xf9   : > { %v4686_v40 = vpop.permute.xlu0 %1440  ;;  %v2479_v3 = vpop.permute.xlu1 %2478  ;;  %v3162_v14 = vcombine.low %v848_v5, %v4583_v47  ;;  %v1294_v30 = vsel %vm1114_vm6, %v1289_v63, %v1293_v31  ;;  %v1296_v13 = vshrl.u32 %v4690_v50, 16  ;;  %v1300_v19 = vrot.slane %v1298_v18, 1  ;;  %v885_v12 = vld [vmem:[#allocation2 + $0xb4] sm:$0xf]  ;;  %v4750_v57 = vld [vmem:[#allocation2 + $0xb8] sm:$0xf] }
  0xfa   : > { %v2743_v59 = vsel %vm2723_vm4, %v2710_v32, %v2479_v3  ;;  %v1303_v24 = vshll.u32 %v4704_v49, 16  ;;  %v1408_v53 = vsel %vm1387_vm2, %v1406_v54, %v1407_v2  ;;  %v1410_v51 = vrot.slane %v4646_v9, 1  ;;  %v887_v2 = vld [vmem:[#allocation2 + $0xc0] sm:$0xf] }
  0xfb   : > { %1319 = vrot.lane.b32.xlu0 %v1198_v35, %s3648_s5  ;;  %3336 = vmatmul.mubr.msk.bf16.vlgmr.msra.gmra.mrb[0].mxu1 %vm2783_vm5, %v2743_v59  ;;  %v1409_v47 = vrot.slane %v3162_v14, 1  ;;  %v3177_v44 = vcombine.low %v869_v58, %v4720_v7  ;;  %v2453_v20 = vsel %vm1387_vm2, %v2451_v41, %v2452_v39  ;;  %v1301_v35 = vor.u32 %v1300_v19, %v1296_v13  ;;  %v4769_v13 = vld [vmem:[#allocation2 + $0xbc] ss:$0 sps:$4 sm:$0x11]  }
  0xfc   : > { %2358 = vrot.lane.b32.xlu1 %v2307_v27, %s3653_s21  ;;  %v1305_v17 = vrot.slane %v1303_v24, 1  ;;  %v3169_v55 = vcombine.low %v855_v4, %v4589_v6  ;;  %v3178_v25 = vcombine.low %v871_v0, %v4733_v36  ;;  %v1431_v32 = vrot.slane %v4660_v8, 1  ;;  %v911_v4 = vld [vmem:[#allocation2 + $0x54] sm:$0xe] }
  0xfd   : > { %v4701_v38 = vpop.permute.xlu0 %1442  ;;  %v4707_v52 = vpop.permute.xlu1 %1329  ;;  %v1411_v9 = vsel %vm1387_vm2, %v1409_v47, %v1410_v51  ;;  %v1703_v1 = vshll.u32 %v3177_v44, 16  ;;  %v3170_v3 = vcombine.low %v856_v22, %v4671_v10  ;;  %v1701_v62 = vshrl.u32 %v3177_v44, 16 }
  0xfe   : > { %v1306_v6 = vsel %vm1114_vm6, %v1301_v35, %v1305_v17  ;;  %v1430_v26 = vrot.slane %v3169_v55, 1  ;;  %v1708_v5 = vshll.u32 %v4741_v11, 16  ;;  %v1434_v31 = vrot.slane %v4704_v49, 1  ;;  %v912_v55 = vld [vmem:[#allocation2 + $0x60] sm:$0xe] }
  0xff   : > { %2470 = vrot.lane.b32.xlu0 %v2429_v48, %s3654_s23  ;;  %v4753_v48 = vld [vmem:[#allocation2 + $0x68] ss:$0 sps:$4 sm:$0x11]   ;;  %v1705_v46 = vrot.slane %v1703_v1, 1  ;;  %v1433_v10 = vrot.slane %v3170_v3, 1  ;;  %v3185_v18 = vcombine.low %v885_v12, %v4750_v57  ;;  %v1713_v58 = vshrl.u32 %v3178_v25, 16 }
 0x100   : > { %2484 = vrot.lane.b32.xlu1 %v2450_v34, %s3654_s23  ;;  %v1715_v34 = vshll.u32 %v3178_v25, 16  ;;  %v1432_v8 = vsel %vm1387_vm2, %v1430_v26, %v1431_v32  ;;  %v1720_v41 = vshll.u32 %v4753_v48, 16  ;;  %v1710_v14 = vrot.slane %v1708_v5, 1  ;;  %v4784_v1 = vld [vmem:[#allocation2 + $0xc8] ss:$0 sps:$4 sm:$0x11]  }
 0x101   : > { %v4715_v61 = vpop.permute.xlu0 %1552  ;;  %v4722_v37 = vpop.permute.xlu1 %1456  ;;  %v1706_v39 = vor.u32 %v1705_v46, %v1701_v62  ;;  %v1435_v19 = vsel %vm1387_vm2, %v1433_v10, %v1434_v31  ;;  %v3209_v35 = vcombine.low %v911_v4, %v4720_v7  ;;  %v1804_v17 = vshll.u32 %v4769_v13, 16  ;;  %v934_v32 = vld [vmem:[#allocation2 + $0x60] sm:$0xf]  ;;  %v4793_v46 = vld [vmem:[#allocation2 + $0x64] sm:$0xf] }
 0x102   : > { %v1722_v51 = vrot.slane %v1720_v41, 1  ;;  %v1797_v22 = vshrl.u32 %v3185_v18, 16  ;;  %v1919_v12 = vrot.slane %v4741_v11, 1  ;;  %v1816_v31 = vshll.u32 %v4784_v1, 16 }
 0x103   : > { %1321 = vrot.lane.b32.xlu0 %v1210_v15, %s3648_s5  ;;  %v4764_v15 = vld [vmem:[#allocation2 + $0xc4] sm:$0xf]  ;;  %v1918_v3 = vrot.slane %v3209_v35, 1  ;;  %v1806_v62 = vrot.slane %v1804_v17, 1  ;;  %v1943_v35 = vrot.slane %v4769_v13, 1 }
 0x104   : > { %1335 = vrot.lane.b32.xlu1 %v1294_v30, %s3648_s5  ;;  %v1717_v30 = vrot.slane %v1715_v34, 1  ;;  %v3186_v24 = vcombine.low %v887_v2, %v4764_v15  ;;  %v919_v2 = vld [vmem:[#allocation2 + $0xb4] sm:$0xe]  ;;  %v4816_v17 = vld [vmem:[#allocation2 + $0x68] ss:$0 sps:$4 sm:$0x11]  }
 0x105   : > { %v4729_v29 = vpop.permute.xlu0 %1554  ;;  %v4735_v33 = vpop.permute.xlu1 %1458  ;;  %v1920_v11 = vsel %vm1387_vm2, %v1918_v3, %v1919_v12  ;;  %v2498_v3 = vsel %vm2492_vm11, %v4000_v21, %v4599_v56  ;;  %v4828_v12 = vld [vmem:[#allocation2 + $0x74] ss:$0 sps:$4 sm:$0x11]  }
 0x107   : > { %1448 = vrot.lane.b32.xlu0 %v1408_v53, %s3647_s4  ;;  %v1799_v53 = vshll.u32 %v3185_v18, 16 }
 0x108   : > { %2486 = vrot.lane.b32.xlu1 %v2453_v20, %s3654_s23  ;;  %v1718_v20 = vor.u32 %v1717_v30, %v1713_v58  ;;  %v936_v58 = vld [vmem:[#allocation2 + $0x6c] sm:$0xf]  ;;  %v4804_v30 = vld [vmem:[#allocation2 + $0x70] sm:$0xf] }
 0x109   : > { %v4743_v27 = vpop.permute.xlu0 %1824  ;;  %v4748_v59 = vpop.permute.xlu1 %1568 }
 0x10a   : > { %v1723_v7 = vsel %vm1114_vm6, %v1718_v20, %v1722_v51  ;;  %v1818_v51 = vrot.slane %v1816_v31, 1  ;;  %v920_v20 = vld [vmem:[#allocation2 + $0xc0] sm:$0xe] }
 0x10b   : > { %1450 = vrot.lane.b32.xlu0 %v1411_v9, %s3647_s4  ;;  %v1801_v9 = vrot.slane %v1799_v53, 1 }
 0x10c   : > { %1337 = vrot.lane.b32.xlu1 %v1306_v6, %s3648_s5  ;;  %v1811_v6 = vshll.u32 %v3186_v24, 16 }
 0x10d   : > { %v4757_v63 = vpop.permute.xlu0 %1826  ;;  %v4762_v54 = vpop.permute.xlu1 %1570  ;;  %v1802_v34 = vor.u32 %v1801_v9, %v1797_v22 }
 0x10e   : > { %v1813_v10 = vrot.slane %v1811_v6, 1  ;;  %v3218_v6 = vcombine.low %v920_v20, %v4764_v15 }
 0x10f   : > { %1560 = vrot.lane.b32.xlu0 %v3177_v44, %s3649_s6  ;;  %v1711_v44 = vsel %vm1114_vm6, %v1706_v39, %v1710_v14  ;;  %v1922_v39 = vrot.slane %v4753_v48, 1  ;;  %v3217_v14 = vcombine.low %v919_v2, %v4750_v57  ;;  %v1807_v4 = vsel %vm1114_vm6, %v1802_v34, %v1806_v62 }
 0x110   : > { %1464 = vrot.lane.b32.xlu1 %v1432_v8, %s3647_s4  ;;  %v1809_v8 = vshrl.u32 %v3186_v24, 16  ;;  %v2531_v34 = vsel %vm2525_vm12, %v2498_v3, %v4686_v40  ;;  %v1945_v56 = vrot.slane %v3218_v6, 1  ;;  %v1946_v2 = vrot.slane %v4784_v1, 1  ;;  %v976_v1 = vld [vmem:[#allocation2 + $0x60] sm:$0xe] }
 0x111   : > { %v4771_v49 = vpop.permute.xlu0 %1952  ;;  %v4775_v47 = vpop.permute.xlu1 %1840  ;;  %v1942_v48 = vrot.slane %v3217_v14, 1  ;;  %v2564_v31 = vsel %vm2558_vm13, %v2531_v34, %v4715_v61  ;;  %v3257_v3 = vcombine.low %v976_v1, %v4793_v46 }
 0x112   : > { %v1814_v53 = vor.u32 %v1813_v10, %v1809_v8  ;;  %v2220_v10 = vshll.u32 %v4816_v17, 16  ;;  %v2597_v40 = vsel %vm2591_vm14, %v2564_v31, %v4743_v27 }
 0x113   : > { %1562 = vrot.lane.b32.xlu0 %v3178_v25, %s3649_s6  ;;  %v3210_v25 = vcombine.low %v912_v55, %v4733_v36  ;;  %v3225_v36 = vcombine.low %v934_v32, %v4793_v46  ;;  %v950_v32 = vld [vmem:[#allocation2 + $0xc0] sm:$0xf]  ;;  %v1944_v15 = vsel %vm1387_vm2, %v1942_v48, %v1943_v35  ;;  %v4856_v48 = vld [vmem:[#allocation2 + $0xc8] ss:$0 sps:$4 sm:$0x11]  }
 0x114   : > { %1466 = vrot.lane.b32.xlu1 %v1435_v19, %s3647_s4  ;;  %v1819_v9 = vsel %vm1114_vm6, %v1814_v53, %v1818_v51  ;;  %v2232_v53 = vshll.u32 %v4828_v12, 16  ;;  %v977_v35 = vld [vmem:[#allocation2 + $0x6c] sm:$0xe] }
 0x115   : > { %v4782_v0 = vpop.permute.xlu0 %1954  ;;  %v4786_v26 = vpop.permute.xlu1 %1842  ;;  %v2215_v55 = vshll.u32 %v3225_v36, 16  ;;  %v2213_v13 = vshrl.u32 %v3225_v36, 16 }
 0x117   : > { %1832 = vrot.lane.b32.xlu0 %v1711_v44, %s3650_s7  ;;  %v2217_v8 = vrot.slane %v2215_v55, 1 }
 0x118   : > { %1576 = vrot.lane.b32.xlu1 %v3185_v18, %s3649_s6  ;;  %v1921_v18 = vrot.slane %v3210_v25, 1 }
 0x119   : > { %v2065_v5 = vpop.permute.xlu0 %2064  ;;  %v4796_v41 = vpop.permute.xlu1 %1968  ;;  %v2218_v20 = vor.u32 %v2217_v8, %v2213_v13  ;;  %v2514_v13 = vsel %vm2492_vm11, %v4044_v28, %v4668_v60  ;;  %v4876_v8 = vld [vmem:[#allocation2 + $0xd4] ss:$0 sps:$4 sm:$0x11]  }
 0x11a   : > { %v1923_v57 = vsel %vm1387_vm2, %v1921_v18, %v1922_v39  ;;  %v952_v18 = vld [vmem:[#allocation2 + $0xcc] sm:$0xf]  ;;  %v4841_v39 = vld [vmem:[#allocation2 + $0xd0] sm:$0xf]  ;;  %v2547_v28 = vsel %vm2525_vm12, %v2514_v13, %v4722_v37 }
 0x11b   : > { %1834 = vrot.lane.b32.xlu0 %v1723_v7, %s3650_s7  ;;  %v4822_v7 = vld [vmem:[#allocation2 + $0xc4] sm:$0xf]  ;;  %v4854_v27 = vcombine.low %v952_v18, %v4841_v39  ;;  %v2431_v18 = vrot.slane %v4816_v17, 1 }
 0x11c   : > { %1578 = vrot.lane.b32.xlu1 %v3186_v24, %s3649_s6  ;;  %v3226_v24 = vcombine.low %v936_v58, %v4804_v30  ;;  %v2630_v58 = vsel %vm2624_vm15, %v2597_v40, %v4771_v49  ;;  %v2500_v49 = vsel %vm2492_vm11, %v4041_v16, %v4662_v45  ;;  %v2234_v45 = vrot.slane %v2232_v53, 1  ;;  %s5039_s6 = scalar_lea.vmem [#allocation3], %s3116_s29 }
 0x11d   : > { %v4806_v19 = vpop.permute.xlu0 %2066  ;;  %v4809_v44 = vpop.permute.xlu1 %1970  ;;  %v2663_v51 = vsel %vm2657_vm1, %v2630_v58, %v2065_v5  ;;  %v2321_v58 = vshrl.u32 %v4854_v27, 16 }
 0x11e   : > { %v2227_v62 = vshll.u32 %v3226_v24, 16  ;;  %v2225_v61 = vshrl.u32 %v3226_v24, 16 }
 0x11f   : > { %1960 = vrot.lane.b32.xlu0 %v1920_v11, %s3651_s8  ;;  %v3233_v11 = vcombine.low %v950_v32, %v4822_v7 }
 0x120   : > { %1848 = vrot.lane.b32.xlu1 %v1807_v4, %s3650_s7  ;;  %v2229_v4 = vrot.slane %v2227_v62, 1  ;;  %v2533_v62 = vsel %vm2525_vm12, %v2500_v49, %v4701_v38  ;;  %v2323_v38 = vshll.u32 %v4854_v27, 16  ;;  %v2434_v49 = vrot.slane %v4828_v12, 1 }
 0x121   : > { %v2337_v22 = vpop.permute.xlu0 %2336  ;;  %v4820_v25 = vpop.permute.xlu1 %2080  ;;  %v2311_v5 = vshll.u32 %v3233_v11, 16  ;;  %v2309_v46 = vshrl.u32 %v3233_v11, 16  ;;  %v2566_v60 = vsel %vm2558_vm13, %v2533_v62, %v4729_v29 }
 0x122   : > { %v2230_v16 = vor.u32 %v2229_v4, %v2225_v61  ;;  %v2599_v31 = vsel %vm2591_vm14, %v2566_v60, %v4757_v63  ;;  %v2325_v1 = vrot.slane %v2323_v38, 1 }
 0x123   : > { %1962 = vrot.lane.b32.xlu0 %v1923_v57, %s3651_s8  ;;  %v2222_v57 = vrot.slane %v2220_v10, 1  ;;  %v2580_v10 = vsel %vm2558_vm13, %v2547_v28, %v4748_v59  ;;  %v2632_v29 = vsel %vm2624_vm15, %v2599_v31, %v4782_v0 }
 0x124   : > { %1850 = vrot.lane.b32.xlu1 %v1819_v9, %s3650_s7  ;;  %v1947_v9 = vsel %vm1387_vm2, %v1945_v56, %v1946_v2  ;;  %v2430_v2 = vrot.slane %v3257_v3, 1  ;;  %v2613_v37 = vsel %vm2591_vm14, %v2580_v10, %v4775_v47  ;;  %v2235_v40 = vsel %vm1114_vm6, %v2230_v16, %v2234_v45  ;;  %v985_v3 = vld [vmem:[#allocation2 + $0xcc] sm:$0xe]  ;;  %s3293_s7 = sshll.u32 %s3636_s15, 12  ;;  %s5114_s15 = scalar_lea.sflag [#allocation4], %s175_s28 }
 0x125   : > { %v4837_v21 = vpop.permute.xlu0 %2338  ;;  %v4845_v14 = vpop.permute.xlu1 %2082  ;;  %v2223_v34 = vsel %vm1114_vm6, %v2218_v20, %v2222_v57  ;;  %v2646_v59 = vsel %vm2624_vm15, %v2613_v37, %v4796_v41  ;;  %v2665_v63 = vsel %vm2657_vm1, %v2632_v29, %v4806_v19  ;;  %v2328_v47 = vshll.u32 %v4876_v8, 16  ;;  %v984_v19 = vld [vmem:[#allocation2 + $0xc0] sm:$0xe]  ;;  %v5185_v57 = vld [vmem:[#allocation6_spill] sm:$0xff]  ;;  %s5104_s11 = scalar_lea.hbm %s5164_s3, %s3293_s7 }
 0x126   : > { %v2679_v0 = vsel %vm2657_vm1, %v2646_v59, %v4820_v25  ;;  %v2698_v61 = vsel %vm2690_vm3, %v2665_v63, %v4837_v21  ;;  %v2432_v25 = vsel %vm1387_vm2, %v2430_v2, %v2431_v18  ;;  %v2516_v21 = vsel %vm2492_vm11, %v5185_v57, %v4707_v52 }
 0x127   : > { %2072 = vrot.lane.b32.xlu0 %v3225_v36, %s3652_s9  ;;  %v2696_v36 = vsel %vm2690_vm3, %v2663_v51, %v2337_v22  ;;  %v3258_v22 = vcombine.low %v977_v35, %v4804_v30  ;;  %v2313_v30 = vrot.slane %v2311_v5, 1  ;;  %v3266_v16 = vcombine.low %v985_v3, %v4841_v39 }
 0x128   : > { %1976 = vrot.lane.b32.xlu1 %v1944_v15, %s3651_s8  ;;  %v2316_v15 = vshll.u32 %v4856_v48, 16 }
 0x129   : > { %v2465_v55 = vpop.permute.xlu0 %2464  ;;  %v2353_v32 = vpop.permute.xlu1 %2352  ;;  %v2314_v53 = vor.u32 %v2313_v30, %v2309_v46  ;;  %v2433_v35 = vrot.slane %v3258_v22, 1  ;;  %v2457_v46 = vrot.slane %v3266_v16, 1 }
 0x12a   : > { %v2729_v6 = vsel %vm2723_vm4, %v2696_v36, %v2465_v55  ;;  %v2318_v17 = vrot.slane %v2316_v15, 1  ;;  %v2712_v51 = vsel %vm2690_vm3, %v2679_v0, %v2353_v32  ;;  %v2330_v36 = vrot.slane %v2328_v47, 1 }
 0x12b   : > { %2074 = vrot.lane.b32.xlu0 %v3226_v24, %s3652_s9  ;;  %3323 = vmatprep.mubr.msk.bf16.mxu0 %vm2783_vm5, %v2729_v6  ;;  %v2549_v55 = vsel %vm2525_vm12, %v2516_v21, %v4735_v33  ;;  %v2326_v6 = vor.u32 %v2325_v1, %v2321_v58  ;;  %v3265_v32 = vcombine.low %v984_v19, %v4822_v7  ;;  %v2458_v15 = vrot.slane %v4876_v8, 1 }
 0x12c   : > { %1978 = vrot.lane.b32.xlu1 %v1947_v9, %s3651_s8  ;;  %v2319_v5 = vsel %vm1114_vm6, %v2314_v53, %v2318_v17  ;;  %v2582_v52 = vsel %vm2558_vm13, %v2549_v55, %v4762_v54  ;;  %v2435_v33 = vsel %vm1387_vm2, %v2433_v35, %v2434_v49  ;;  %s3030_s8 = sshll.u32 %s5039_s6, 4  ;;  %s5108_s8 = int_to_ptr.vmem [resolvable:$true] %s3030_s8 }
 0x12d   : > { %v4882_v24 = vpop.permute.xlu0 %1315  ;;  %v2355_v56 = vpop.permute.xlu1 %2354  ;;  %v2615_v13 = vsel %vm2591_vm14, %v2582_v52, %v4786_v26  ;;  %v2331_v54 = vsel %vm1114_vm6, %v2326_v6, %v2330_v36  ;;  %v2454_v22 = vrot.slane %v3265_v32, 1  ;;  %v2455_v26 = vrot.slane %v4856_v48, 1  ;;  %v5188_v36 = vld [vmem:[#allocation8_spill] sm:$0xff]  ;;  %s3566_s18 = scalar_lea.vmem %s5108_s8, 4096 }
 0x12e   : > { %v2648_v12 = vsel %vm2624_vm15, %v2615_v13, %v4809_v44  ;;  %v2459_v60 = vsel %vm1387_vm2, %v2457_v46, %v2458_v15  ;;  %p3567_p12 = scmp.ne.s32.totalorder %s5108_s8, %s3566_s18 }
 0x12f   : > { %2344 = vrot.lane.b32.xlu0 %v2223_v34, %s3653_s21  ;;  %v2681_v7 = vsel %vm2657_vm1, %v2648_v12, %v4845_v14  ;;  %v2456_v14 = vsel %vm1387_vm2, %v2454_v22, %v2455_v26 }
 0x130   : > { %2088 = vrot.lane.b32.xlu1 %v3233_v11, %s3652_s9  ;;  %v2714_v62 = vsel %vm2690_vm3, %v2681_v7, %v2355_v56  ;;  %p3568_p13 = pnand %p3567_p12, %p3717_p4 }
 0x131   : > { %v2467_v4 = vpop.permute.xlu0 %2466  ;;  %v2481_v20 = vpop.permute.xlu1 %2480 }
 0x132   : > { %v2731_v41 = vsel %vm2723_vm4, %v2698_v61, %v2467_v4  ;;  %v2745_v11 = vsel %vm2723_vm4, %v2712_v51, %v2481_v20  ;;  %v5186_v61 = vld [vmem:[#allocation7_spill] sm:$0xff]  ;;  %p3569_p0 = pneg %p3568_p13 }
 0x133   : > { %2346 = vrot.lane.b32.xlu0 %v2235_v40, %s3653_s21  ;;  %3324 = vmatmul.mubr.msk.bf16.gmra.mrb[4].mxu0 %vm2783_vm5, %v2731_v41  ;;  %v2502_v4 = vsel %vm2492_vm11, %v5186_v61, %v4882_v24 }
 0x134   : > { %2090 = vrot.lane.b32.xlu1 %v4854_v27, %s3652_s9  ;;  %3339 = vmatprep.mubr.msk.bf16.mxu1 %vm2783_vm5, %v2745_v11 }
 0x135   : > { %v1318_v9 = vpop.permute.xlu0 %1317  ;;  %v1332_v27 = vpop.permute.xlu1 %1331 }
 0x136   : > { %v2518_v55 = vsel %vm2492_vm11, %v5188_v36, %v1332_v27 }
 0x137   : > { %2472 = vrot.lane.b32.xlu0 %v2432_v25, %s3654_s23  ;;  %v5187_v25 = vld [vmem:[#allocation9_spill] sm:$0xff] }
 0x138   : > { %2360 = vrot.lane.b32.xlu1 %v2319_v5, %s3653_s21  ;;  %v2504_v57 = vsel %vm2492_vm11, %v5187_v25, %v1318_v9 }
 0x139   : > { %v1445_v45 = vpop.permute.xlu0 %1444  ;;  %v2483_v34 = vpop.permute.xlu1 %2482 }
 0x13a   : > { %v2747_v44 = vsel %vm2723_vm4, %v2714_v62, %v2483_v34  ;;  %v2535_v53 = vsel %vm2525_vm12, %v2502_v4, %v1445_v45 }
 0x13b   : > { %2474 = vrot.lane.b32.xlu0 %v2435_v33, %s3654_s23  ;;  %3340 = vmatmul.mubr.msk.bf16.gmra.mrb[4].mxu1 %vm2783_vm5, %v2747_v44  ;;  %v5189_v44 = vld [vmem:[#allocation10_spill] sm:$0xff] }
 0x13c   : > { %2362 = vrot.lane.b32.xlu1 %v2331_v54, %s3653_s21  ;;  %s3570_s21 = sshll.u32 %s3655_s19, 4  ;;  %s3571_s21 = int_to_ptr.vmem [resolvable:$false] %s3570_s21 }
 0x13d   : > { %v1447_v39 = vpop.permute.xlu0 %1446  ;;  %v1334_v28 = vpop.permute.xlu1 %1333  ;;  %p3573_p1 = scmp.lt.s32.totalorder %s5108_s8, %s3571_s21 }
 0x13e   : > { %v2537_v5 = vsel %vm2525_vm12, %v2504_v57, %v1447_v39  ;;  %v2520_v39 = vsel %vm2492_vm11, %v5189_v44, %v1334_v28 }
 0x140   : > { %2488 = vrot.lane.b32.xlu1 %v2456_v14, %s3654_s23 }
 0x141   : > { %v1557_v48 = vpop.permute.xlu0 %1556  ;;  %v1461_v30 = vpop.permute.xlu1 %1460 }
 0x142   : > { %v2568_v1 = vsel %vm2558_vm13, %v2535_v53, %v1557_v48  ;;  %v2551_v6 = vsel %vm2525_vm12, %v2518_v55, %v1461_v30 }
 0x144   : > { %2490 = vrot.lane.b32.xlu1 %v2459_v60, %s3654_s23  ;;  %s3572_s23 = scalar_lea.vmem %s3571_s21, 8192 }
 0x145   : > { %v1559_v38 = vpop.permute.xlu0 %1558  ;;  %v1463_v10 = vpop.permute.xlu1 %1462  ;;  %p3574_p2 = scmp.lt.s32.totalorder %s3572_s23, %s3566_s18 }
 0x146   : > { %v2570_v32 = vsel %vm2558_vm13, %v2537_v5, %v1559_v38  ;;  %v2553_v14 = vsel %vm2525_vm12, %v2520_v39, %v1463_v10 }
 0x147   : > { %p3575_p3 = por %p3574_p2, %p3573_p1 }
 0x149   : > { %v1829_v31 = vpop.permute.xlu0 %1828  ;;  %v1573_v56 = vpop.permute.xlu1 %1572  ;;  %p3576_p5 = pnand %p3575_p3, %p3569_p0 }
 0x14a   : > { %v2601_v41 = vsel %vm2591_vm14, %v2568_v1, %v1829_v31  ;;  %v2584_v9 = vsel %vm2558_vm13, %v2551_v6, %v1573_v56 }
 0x14d   : > { %v1831_v2 = vpop.permute.xlu0 %1830  ;;  %v1575_v18 = vpop.permute.xlu1 %1574 }
 0x14e   : > { %v2603_v52 = vsel %vm2591_vm14, %v2570_v32, %v1831_v2  ;;  %v2586_v15 = vsel %vm2558_vm13, %v2553_v14, %v1575_v18 }
 0x151   : > { %v1957_v37 = vpop.permute.xlu0 %1956  ;;  %v1845_v29 = vpop.permute.xlu1 %1844 }
 0x152   : > { %v2634_v19 = vsel %vm2624_vm15, %v2601_v41, %v1957_v37  ;;  %v2617_v12 = vsel %vm2591_vm14, %v2584_v9, %v1845_v29 }
 0x155   : > { %v1959_v40 = vpop.permute.xlu0 %1958  ;;  %v1847_v58 = vpop.permute.xlu1 %1846 }
 0x156   : > { %v2636_v33 = vsel %vm2624_vm15, %v2603_v52, %v1959_v40  ;;  %v2619_v60 = vsel %vm2591_vm14, %v2586_v15, %v1847_v58 }
 0x159   : > { %v2069_v8 = vpop.permute.xlu0 %2068  ;;  %v1973_v59 = vpop.permute.xlu1 %1972 }
 0x15a   : > { %v2667_v11 = vsel %vm2657_vm1, %v2634_v19, %v2069_v8  ;;  %v2650_v16 = vsel %vm2624_vm15, %v2617_v12, %v1973_v59 }
 0x15d   : > { %v2071_v63 = vpop.permute.xlu0 %2070 }
 0x15e   : > { %v1975_v17 = vpop.permute.xlu1 %1974  ;;  %v2669_v27 = vsel %vm2657_vm1, %v2636_v33, %v2071_v63 }
 0x15f   : > { %v2652_v30 = vsel %vm2624_vm15, %v2619_v60, %v1975_v17 }
 0x161   : > { %v2341_v47 = vpop.permute.xlu0 %2340 }
 0x162   : > { %v2085_v0 = vpop.permute.xlu1 %2084  ;;  %v2700_v21 = vsel %vm2690_vm3, %v2667_v11, %v2341_v47 }
 0x163   : > { %v2683_v7 = vsel %vm2657_vm1, %v2650_v16, %v2085_v0 }
 0x165   : > { %v2343_v51 = vpop.permute.xlu0 %2342 }
 0x166   : > { %v2087_v20 = vpop.permute.xlu1 %2086  ;;  %v2702_v45 = vsel %vm2690_vm3, %v2669_v27, %v2343_v51 }
 0x167   : > { %v2685_v38 = vsel %vm2657_vm1, %v2652_v30, %v2087_v20 }
 0x169   : > { %v2469_v35 = vpop.permute.xlu0 %2468 }
 0x16a   : > { %v2733_v24 = vsel %vm2723_vm4, %v2700_v21, %v2469_v35  ;;  %v2357_v49 = vpop.permute.xlu1 %2356 }
 0x16b   : > { %3327 = vmatprep.mubr.msk.bf16.mxu0 %vm2783_vm5, %v2733_v24  ;;  %v2716_v22 = vsel %vm2690_vm3, %v2683_v7, %v2357_v49 }
 0x16d   : > { %v1320_v3 = vpop.permute.xlu0 %1319 }
 0x16e   : > { %v2359_v13 = vpop.permute.xlu1 %2358  ;;  %v2506_v11 = vsel %vm2492_vm11, %v4543_v42, %v1320_v3 }
 0x16f   : > { %v2718_v56 = vsel %vm2690_vm3, %v2685_v38, %v2359_v13 }
 0x171   : > { %v2471_v54 = vpop.permute.xlu0 %2470 }
 0x172   : > { %v2735_v26 = vsel %vm2723_vm4, %v2702_v45, %v2471_v54  ;;  %v2485_v62 = vpop.permute.xlu1 %2484 }
 0x173   : > { %v2749_v34 = vsel %vm2723_vm4, %v2716_v22, %v2485_v62  ;;  %3328 = vmatmul.mubr.msk.bf16.gmra.mrb[8].mxu0 %vm2783_vm5, %v2735_v26 }
 0x174   : > { %3343 = vmatprep.mubr.msk.bf16.mxu1 %vm2783_vm5, %v2749_v34 }
 0x175   : > { %v1322_v46 = vpop.permute.xlu0 %1321 }
 0x176   : > { %v1336_v48 = vpop.permute.xlu1 %1335  ;;  %v2508_v57 = vsel %vm2492_vm11, %v4597_v43, %v1322_v46 }
 0x177   : > { %v2522_v13 = vsel %vm2492_vm11, %v4605_v23, %v1336_v48 }
 0x179   : > { %v1449_v31 = vpop.permute.xlu0 %1448 }
 0x17a   : > { %v2487_v2 = vpop.permute.xlu1 %2486  ;;  %v2539_v25 = vsel %vm2525_vm12, %v2506_v11, %v1449_v31  ;;  %v5035_v31 = vld [vmem:[%s5163_s2] ss:$0 sm:$0xff] }
 0x17b   : > { %v2751_v28 = vsel %vm2723_vm4, %v2718_v56, %v2487_v2 }
 0x17c   : > { %3344 = vmatmul.mubr.msk.bf16.gmra.mrb[8].mxu1 %vm2783_vm5, %v2751_v28 }
 0x17d   : > { %v1451_v37 = vpop.permute.xlu0 %1450 }
 0x17e   : > { %v1338_v10 = vpop.permute.xlu1 %1337  ;;  %v2541_v55 = vsel %vm2525_vm12, %v2508_v57, %v1451_v37 }
 0x17f   : > { %v2524_v26 = vsel %vm2492_vm11, %v4690_v50, %v1338_v10 }
 0x181   : > { %v1561_v29 = vpop.permute.xlu0 %1560 }
 0x182   : > { %v1465_v40 = vpop.permute.xlu1 %1464  ;;  %v2572_v21 = vsel %vm2558_vm13, %v2539_v25, %v1561_v29 }
 0x183   : > { %v2555_v33 = vsel %vm2525_vm12, %v2522_v13, %v1465_v40 }
 0x185   : > { %v1563_v18 = vpop.permute.xlu0 %1562 }
 0x186   : > { %v1467_v8 = vpop.permute.xlu1 %1466  ;;  %v2574_v6 = vsel %vm2558_vm13, %v2541_v55, %v1563_v18 }
 0x187   : > { %v2557_v62 = vsel %vm2525_vm12, %v2524_v26, %v1467_v8 }
 0x189   : > { %v1833_v59 = vpop.permute.xlu0 %1832 }
 0x18a   : > { %v1577_v58 = vpop.permute.xlu1 %1576  ;;  %v2605_v24 = vsel %vm2591_vm14, %v2572_v21, %v1833_v59 }
 0x18b   : > { %v2588_v7 = vsel %vm2558_vm13, %v2555_v33, %v1577_v58 }
 0x18d   : > { %v1835_v63 = vpop.permute.xlu0 %1834 }
 0x18e   : > { %v1579_v17 = vpop.permute.xlu1 %1578  ;;  %v2607_v3 = vsel %vm2591_vm14, %v2574_v6, %v1835_v63 }
 0x18f   : > { %v2590_v44 = vsel %vm2558_vm13, %v2557_v62, %v1579_v17 }
 0x191   : > { %v1961_v47 = vpop.permute.xlu0 %1960 }
 0x192   : > { %v1849_v0 = vpop.permute.xlu1 %1848  ;;  %v2638_v36 = vsel %vm2624_vm15, %v2605_v24, %v1961_v47 }
 0x193   : > { %v2621_v22 = vsel %vm2591_vm14, %v2588_v7, %v1849_v0 }
 0x195   : > { %v1963_v61 = vpop.permute.xlu0 %1962 }
 0x196   : > { %v1851_v4 = vpop.permute.xlu1 %1850  ;;  %v2640_v52 = vsel %vm2624_vm15, %v2607_v3, %v1963_v61 }
 0x197   : > { %v2623_v46 = vsel %vm2591_vm14, %v2590_v44, %v1851_v4 }
 0x199   : > { %v2073_v53 = vpop.permute.xlu0 %2072 }
 0x19a   : > { %v1977_v1 = vpop.permute.xlu1 %1976  ;;  %v2671_v5 = vsel %vm2657_vm1, %v2638_v36, %v2073_v53 }
 0x19b   : > { %v2654_v23 = vsel %vm2624_vm15, %v2621_v22, %v1977_v1 }
 0x19d   : > { %v2075_v51 = vpop.permute.xlu0 %2074 }
 0x19e   : > { %v1979_v41 = vpop.permute.xlu1 %1978  ;;  %v2673_v12 = vsel %vm2657_vm1, %v2640_v52, %v2075_v51 }
 0x19f   : > { %v2656_v48 = vsel %vm2624_vm15, %v2623_v46, %v1979_v41 }
 0x1a1   : > { %v2345_v20 = vpop.permute.xlu0 %2344 }
 0x1a2   : > { %v2089_v19 = vpop.permute.xlu1 %2088  ;;  %v2704_v42 = vsel %vm2690_vm3, %v2671_v5, %v2345_v20 }
 0x1a3   : > { %v2687_v34 = vsel %vm2657_vm1, %v2654_v23, %v2089_v19 }
 0x1a5   : > { %v2347_v35 = vpop.permute.xlu0 %2346 }
 0x1a6   : > { %v2091_v49 = vpop.permute.xlu1 %2090  ;;  %v2706_v16 = vsel %vm2690_vm3, %v2673_v12, %v2347_v35 }
 0x1a7   : > { %v2689_v50 = vsel %vm2657_vm1, %v2656_v48, %v2091_v49 }
 0x1a9   : > { %v2473_v32 = vpop.permute.xlu0 %2472 }
 0x1aa   : > { %v2737_v43 = vsel %vm2723_vm4, %v2704_v42, %v2473_v32  ;;  %v2361_v9 = vpop.permute.xlu1 %2360 }
 0x1ab   : > { %3331 = vmatprep.mubr.msk.bf16.mxu0 %vm2783_vm5, %v2737_v43  ;;  %v2720_v39 = vsel %vm2690_vm3, %v2687_v34, %v2361_v9 }
 0x1ad   : > { %v2475_v27 = vpop.permute.xlu0 %2474 }
 0x1ae   : > { %v2739_v45 = vsel %vm2723_vm4, %v2706_v16, %v2475_v27  ;;  %v2363_v54 = vpop.permute.xlu1 %2362 }
 0x1af   : > { %3332 = vmatmul.mubr.msk.bf16.gmra.mrb[12].mxu0 %vm2783_vm5, %v2739_v45  ;;  %v2722_v60 = vsel %vm2690_vm3, %v2689_v50, %v2363_v54 }
 0x1b2   : > { %v2489_v14 = vpop.permute.xlu1 %2488 }
 0x1b3   : > { %v2753_v15 = vsel %vm2723_vm4, %v2720_v39, %v2489_v14 }
 0x1b4   : > { %3347 = vmatprep.mubr.msk.bf16.mxu1 %vm2783_vm5, %v2753_v15 }
 0x1b6   : > { %v2491_v30 = vpop.permute.xlu1 %2490 }
 0x1b7   : > { %v2755_v38 = vsel %vm2723_vm4, %v2722_v60, %v2491_v30 }
 0x1b8   : > { %3348 = vmatmul.mubr.msk.bf16.gmra.mrb[12].mxu1 %vm2783_vm5, %v2755_v38 }
 0x1c6   : > { %v3321_v56 = vpop.f32.mrb[0].mxu0 }
 0x1c7   : > { %v2863_v2 = vadd.f32 %v3321_v56, %v5035_v31  ;;  %v2854_v28 = vpop.f32.mrb[1].mxu0 }
 0x1c8   : > { %v2855_v37 = vadd.f32 %v5035_v31, %v2854_v28  ;;  %v3322_v10 = vpop.f32.mrb[2].mxu0 }
 0x1c9   : > { %2983 = vst [vmem:[%s5039_s6 + $0x10] sm:$0xff] %v2863_v2  ;;  %v2866_v29 = vadd.f32 %v3322_v10, %v5035_v31  ;;  %v2857_v40 = vpop.f32.mrb[3].mxu0 }
 0x1ca   : > { %2981 = vst [vmem:[%s5039_s6] sm:$0xff] %v2855_v37  ;;  %v2858_v18 = vadd.f32 %v5035_v31, %v2857_v40 }
 0x1cb   : > { %2984 = vst [vmem:[%s5039_s6 + $0x18] sm:$0xff] %v2866_v29 }
 0x1cc   : > { %2982 = vst [vmem:[%s5039_s6 + $0x8] sm:$0xff] %v2858_v18 }
 0x1ce   : > { %v3337_v8 = vpop.f32.mrb[0].mxu1 }
 0x1cf   : > { %v2927_v59 = vadd.f32 %v3337_v8, %v5035_v31  ;;  %v2918_v58 = vpop.f32.mrb[1].mxu1 }
 0x1d0   : > { %v2919_v63 = vadd.f32 %v5035_v31, %v2918_v58  ;;  %v3338_v17 = vpop.f32.mrb[2].mxu1 }
 0x1d1   : > { %2999 = vst [vmem:[%s5039_s6 + $0x90] sm:$0xff] %v2927_v59  ;;  %v2930_v47 = vadd.f32 %v3338_v17, %v5035_v31  ;;  %v2921_v0 = vpop.f32.mrb[3].mxu1 }
 0x1d2   : > { %2997 = vst [vmem:[%s5039_s6 + $0x80] sm:$0xff] %v2919_v63  ;;  %v2922_v61 = vadd.f32 %v5035_v31, %v2921_v0 }
 0x1d3   : > { %3000 = vst [vmem:[%s5039_s6 + $0x98] sm:$0xff] %v2930_v47 }
 0x1d4   : > { %2998 = vst [vmem:[%s5039_s6 + $0x88] sm:$0xff] %v2922_v61 }
 0x206   : > { %v3325_v4 = vpop.f32.mrb[4].mxu0 }
 0x207   : > { %v2879_v53 = vadd.f32 %v3325_v4, %v5035_v31  ;;  %v2870_v1 = vpop.f32.mrb[5].mxu0 }
 0x208   : > { %v2871_v51 = vadd.f32 %v5035_v31, %v2870_v1  ;;  %v3326_v41 = vpop.f32.mrb[6].mxu0 }
 0x209   : > { %2987 = vst [vmem:[%s5039_s6 + $0x30] sm:$0xff] %v2879_v53  ;;  %v2882_v20 = vadd.f32 %v3326_v41, %v5035_v31  ;;  %v2873_v19 = vpop.f32.mrb[7].mxu0 }
 0x20a   : > { %2985 = vst [vmem:[%s5039_s6 + $0x20] sm:$0xff] %v2871_v51  ;;  %v2874_v11 = vadd.f32 %v5035_v31, %v2873_v19 }
 0x20b   : > { %2988 = vst [vmem:[%s5039_s6 + $0x38] sm:$0xff] %v2882_v20 }
 0x20c   : > { %2986 = vst [vmem:[%s5039_s6 + $0x28] sm:$0xff] %v2874_v11 }
 0x20e   : > { %v3341_v25 = vpop.f32.mrb[4].mxu1 }
 0x20f   : > { %v2943_v57 = vadd.f32 %v3341_v25, %v5035_v31  ;;  %v2934_v21 = vpop.f32.mrb[5].mxu1 }
 0x210   : > { %v2935_v35 = vadd.f32 %v5035_v31, %v2934_v21  ;;  %v3342_v24 = vpop.f32.mrb[6].mxu1 }
 0x211   : > { %3003 = vst [vmem:[%s5039_s6 + $0xb0] sm:$0xff] %v2943_v57  ;;  %v2946_v49 = vadd.f32 %v3342_v24, %v5035_v31  ;;  %v2937_v36 = vpop.f32.mrb[7].mxu1 }
 0x212   : > { %3001 = vst [vmem:[%s5039_s6 + $0xa0] sm:$0xff] %v2935_v35  ;;  %v2938_v55 = vadd.f32 %v5035_v31, %v2937_v36 }
 0x213   : > { %3004 = vst [vmem:[%s5039_s6 + $0xb8] sm:$0xff] %v2946_v49 }
 0x214   : > { %3002 = vst [vmem:[%s5039_s6 + $0xa8] sm:$0xff] %v2938_v55 }
 0x246   : > { %v3329_v5 = vpop.f32.mrb[8].mxu0 }
 0x247   : > { %v2895_v6 = vadd.f32 %v3329_v5, %v5035_v31  ;;  %v2886_v42 = vpop.f32.mrb[9].mxu0 }
 0x248   : > { %v2887_v32 = vadd.f32 %v5035_v31, %v2886_v42  ;;  %v3330_v3 = vpop.f32.mrb[10].mxu0 }
 0x249   : > { %2991 = vst [vmem:[%s5039_s6 + $0x50] sm:$0xff] %v2895_v6  ;;  %v2898_v43 = vadd.f32 %v3330_v3, %v5035_v31  ;;  %v2889_v9 = vpop.f32.mrb[11].mxu0 }
 0x24a   : > { %2989 = vst [vmem:[%s5039_s6 + $0x40] sm:$0xff] %v2887_v32  ;;  %v2890_v52 = vadd.f32 %v5035_v31, %v2889_v9 }
 0x24b   : > { %2992 = vst [vmem:[%s5039_s6 + $0x58] sm:$0xff] %v2898_v43 }
 0x24c   : > { %2990 = vst [vmem:[%s5039_s6 + $0x48] sm:$0xff] %v2890_v52 }
 0x24f   : > { %v3345_v13 = vpop.f32.mrb[8].mxu1 }
 0x250   : > { %v2959_v12 = vadd.f32 %v3345_v13, %v5035_v31  ;;  %v2950_v33 = vpop.f32.mrb[9].mxu1 }
 0x251   : > { %v2951_v16 = vadd.f32 %v5035_v31, %v2950_v33  ;;  %v3346_v27 = vpop.f32.mrb[10].mxu1 }
 0x252   : > { %3007 = vst [vmem:[%s5039_s6 + $0xd0] sm:$0xff] %v2959_v12  ;;  %v2962_v7 = vadd.f32 %v3346_v27, %v5035_v31  ;;  %v2953_v45 = vpop.f32.mrb[11].mxu1 }
 0x253   : > { %3005 = vst [vmem:[%s5039_s6 + $0xc0] sm:$0xff] %v2951_v16  ;;  %v2954_v54 = vadd.f32 %v5035_v31, %v2953_v45 }
 0x254   : > { %3008 = vst [vmem:[%s5039_s6 + $0xd8] sm:$0xff] %v2962_v7 }
 0x255   : > { %3006 = vst [vmem:[%s5039_s6 + $0xc8] sm:$0xff] %v2954_v54 }
 0x282   : > { %v3333_v22 = vpop.f32.mrb[12].mxu0 }
 0x283   : > { %v2911_v26 = vadd.f32 %v3333_v22, %v5035_v31  ;;  %v2902_v23 = vpop.f32.mrb[13].mxu0 }
 0x284   : > { %v2903_v62 = vadd.f32 %v5035_v31, %v2902_v23  ;;  %v3334_v34 = vpop.f32.mrb[14].mxu0 }
 0x285   : > { %2995 = vst [vmem:[%s5039_s6 + $0x70] sm:$0xff] %v2911_v26  ;;  %v2914_v44 = vadd.f32 %v3334_v34, %v5035_v31  ;;  %v2905_v39 = vpop.f32.mrb[15].mxu0 }
 0x286   : > { %2993 = vst [vmem:[%s5039_s6 + $0x60] sm:$0xff] %v2903_v62  ;;  %v2906_v14 = vadd.f32 %v5035_v31, %v2905_v39 }
 0x287   : > { %2996 = vst [vmem:[%s5039_s6 + $0x78] sm:$0xff] %v2914_v44 }
 0x288   : > { %2994 = vst [vmem:[%s5039_s6 + $0x68] sm:$0xff] %v2906_v14 }
 0x28b   : > { %v3349_v46 = vpop.f32.mrb[12].mxu1 }
 0x28c   : > { %v2975_v15 = vadd.f32 %v3349_v46, %v5035_v31  ;;  %v2966_v48 = vpop.f32.mrb[13].mxu1 }
 0x28d   : > { %v2967_v50 = vadd.f32 %v5035_v31, %v2966_v48  ;;  %v3350_v60 = vpop.f32.mrb[14].mxu1 }
 0x28e   : > { %3011 = vst [vmem:[%s5039_s6 + $0xf0] sm:$0xff] %v2975_v15  ;;  %v2978_v30 = vadd.f32 %v3350_v60, %v5035_v31  ;;  %v2969_v38 = vpop.f32.mrb[15].mxu1 }
 0x28f   : > { %3009 = vst [vmem:[%s5039_s6 + $0xe0] sm:$0xff] %v2967_v50  ;;  %v2970_v56 = vadd.f32 %v5035_v31, %v2969_v38 }
 0x290   : > { %3012 = vst [vmem:[%s5039_s6 + $0xf8] sm:$0xff] %v2978_v30 }
 0x291   : > { %3010 = vst [vmem:[%s5039_s6 + $0xe8] sm:$0xff] %v2970_v56 }
 0x292   : > { %3579 = shalt.err (!%p3576_p5)
}
 0x293   : > { %s3580_s26 = scalar_lea.hbm %s5104_s11, 4096  ;;  %s3584_s29 = scalar_lea.hbm %s5164_s3, 8192 }
 0x294   : > { %p3581_p6 = scmp.ne.s32.totalorder %s5104_s11, %s3580_s26  ;;  %p3585_p10 = scmp.lt.u32.totalorder %s5104_s11, %s5164_s3 }
 0x295   : > { %p3586_p11 = scmp.lt.u32.totalorder %s3584_s29, %s3580_s26  ;;  %p3588_p13 = scmp.lt.u32.totalorder %s3580_s26, %s5104_s11 }
 0x296   : > { %p3582_p7 = pnand %p3581_p6, %p3717_p4 }
 0x297   : > { %p3587_p12 = por %p3586_p11, %p3585_p10 }
 0x298   : > { %p3583_p9 = pneg %p3582_p7 }
 0x299   : > { %p3589_p0 = por %p3588_p13, %p3587_p12 }
 0x29b   : > { %p3590_p1 = pnand %p3589_p0, %p3583_p9 }
 0x29d   : > { %3593 = shalt.err (!%p3590_p1)
}
 0x29e   : > { %s3656_s6 = smov 128  }
 0x29f   : > { %3359 = dma.vmem_to_hbm [thread:$0]  (%p3717_p4), %s5108_s8, 4096, %s5104_s11, %s5114_s15, %s3656_s6, %s3656_s6, %s3647_s4  }
 0x2a0 PF: > { %p3365_p2 = scmp.ge.s32.totalorder %s3644_s17, 2  ;;  %s3045_s7 = sand.u32 1, %s3624_s12  }
 0x2a1   : > { %s3046_s9 = scalar_lea.sflag [#allocation4], %s3045_s7 }
 0x2a2   : > { %p3362_p3 = pnand %p3365_p2, %p3724_p8 }
 0x2a4   : > { %3619 = dma.done.wait (!%p3362_p3), %s3046_s9, 4096  }
 0x2a5   : > { %3621 = vsyncadd (!%p3362_p3), %s3046_s9, 4294963200  ;;  %s16_s17 = sadd.s32 1, %s3644_s17   ;;  %s5190_s12 = smov %s3628_s13 }
 0x2a6   : > { %p13_p5 = scmp.ge.s32.totalorder %s16_s17, 4   ;;  %s5191_s13 = smov %s3632_s14 }
 0x2a7   : > { %s5192_s14 = smov %s3730_s25  ;;  %s5193_s15 = smov %s3640_s16 }
 0x2a8   : > { %s5194_s16 = smov %s5196_s20  ;;  %15 = sbr.rel (!%p13_p5) target bundleno = 4 (0x4), region = 81 }
 0x2af   :  { %3051 = vsyncpa [#allocation4], 1 }
 0x2b0   :  { %3053 = vsyncpa [#allocation4 + $0x1], 1 }

</bundles_post_ra>
